<compile_context>
chip_gen: v6e
topology: v6e:2x2x1
jax: 0.10.0
libtpu: 0.0.40
codegen_flags: <defaults>
</compile_context>

<pallas_src>
import jax
import jax.numpy as jnp
from jax.experimental import pallas as pl
from jax.experimental.pallas import tpu as pltpu

EPS = 1e-5
INTER_CHANNELS = 48


def interp_matrix(out_size: int, in_size: int) -> jnp.ndarray:
    """1-D bilinear interpolation matrix (align_corners=True), shape (out, in)."""
    if out_size == 1:
        src = jnp.zeros((1,), jnp.float32)
    else:
        src = jnp.arange(out_size, dtype=jnp.float32) * (
            (in_size - 1) / (out_size - 1)
        )
    i0 = jnp.clip(jnp.floor(src).astype(jnp.int32), 0, in_size - 1)
    i1 = jnp.minimum(i0 + 1, in_size - 1)
    frac = src - i0.astype(jnp.float32)
    m = (
        jax.nn.one_hot(i0, in_size, dtype=jnp.float32) * (1.0 - frac)[:, None]
        + jax.nn.one_hot(i1, in_size, dtype=jnp.float32) * frac[:, None]
    )
    return m


def prepare_feature_fused_params(params, c2_hw, c3_hw, out_hw):
    """One-time, activation-independent operand prep.

    Call once and cache the result; it must NOT be re-done per forward call
    (each of these would otherwise be a separate XLA dispatch on the hot path).
    """
    ho, wo = out_hw
    co = params["w2"].shape[0]
    # BN eval-mode scale folded into the 1x1 conv weight; bf16 MXU operands.
    w2s = (params["w2"] * params["scale2"][:, None]).astype(jnp.bfloat16)  # (Co, 512)
    w3s = (params["w3"] * params["scale3"][:, None]).astype(jnp.bfloat16)  # (Co, 1024)
    b2 = params["bias2"].reshape(co, 1).astype(jnp.float32)
    b3 = params["bias3"].reshape(co, 1).astype(jnp.float32)
    # Combined bilinear-resize operator (align_corners=True), bf16 for the MXU.
    kt2 = jnp.kron(interp_matrix(ho, c2_hw[0]),
                   interp_matrix(wo, c2_hw[1])).T.astype(jnp.bfloat16)  # (Hi2*Wi2, Ho*Wo)
    kt3 = jnp.kron(interp_matrix(ho, c3_hw[0]),
                   interp_matrix(wo, c3_hw[1])).T.astype(jnp.bfloat16)  # (Hi3*Wi3, Ho*Wo)
    return dict(w2=w2s, w3=w3s, b2=b2, b3=b3, kt2=kt2, kt3=kt3)


def _fused_kernel(x3_ref, x2_ref, c4_ref, w3_ref, w2_ref, b3_ref, b2_ref,
                  kt3_ref, kt2_ref, o_ref):
    # x3_ref: (Ci3, N*Hi3*Wi3) f32   batch folded into lanes
    # x2_ref: (Ci2, N*Hi2*Wi2) f32
    # c4_ref: (N, C4, Ho*Wo)   f32   passthrough channels
    # w*_ref: (Co, Ci)         bf16  BN-scale-folded 1x1 conv weight
    # b*_ref: (Co, 1)          f32   folded BN bias
    # kt*_ref:(Hi*Wi, Ho*Wo)   bf16  combined bilinear resize operator
    # o_ref:  (N, C4+2*Co, Ho*Wo) f32
    n, c4c, _ = c4_ref.shape
    co = w3_ref.shape[0]

    # c4 passthrough -> channels [0 : c4c)  (lane-dense 256-wide stores).
    for i in range(n):
        o_ref[i, 0:c4c, :] = c4_ref[i]

    def branch(x_ref, w_ref, b_ref, kt_ref, ch0):
        hw_in = kt_ref.shape[0]
        # One batch-folded conv matmul per branch; in-kernel bf16 cast of the
        # f32 activations (cheap VPU work hidden under the input DMA).
        z = jnp.dot(w_ref[...], x_ref[...].astype(jnp.bfloat16),
                    preferred_element_type=jnp.float32)          # (Co, N*hw_in) f32
        zb = z.astype(jnp.bfloat16)
        for i in range(n):                                        # tiny static batch loop (N=2)
            zi = zb[:, i * hw_in:(i + 1) * hw_in]                 # (Co, hw_in)
            y = jnp.dot(zi, kt_ref[...],
                        preferred_element_type=jnp.float32)       # bf16 MXU resize -> (Co, Ho*Wo)
            y = y + b_ref[...]        # BN bias after resize (exact), f32
            o_ref[i, ch0:ch0 + co, :] = jnp.maximum(y, 0.0)       # ReLU, lane-dense store

    branch(x3_ref, w3_ref, b3_ref, kt3_ref, c4c)        # c3 branch -> [c4c : c4c+Co)
    branch(x2_ref, w2_ref, b2_ref, kt2_ref, c4c + co)   # c2 branch -> [c4c+Co : c4c+2Co)


def feature_fused_forward(c2, c3, c4, prep):
    """Forward pass. `prep` is the cached output of prepare_feature_fused_params."""
    n, c4c, ho, wo = c4.shape
    hw = ho * wo
    _, ci2, hi2, wi2 = c2.shape
    _, ci3, hi3, wi3 = c3.shape
    co = prep["w2"].shape[0]
    c_total = c4c + 2 * co

    # Fold batch into the lane axis: (N, Ci, Hi*Wi) -> (Ci, N*Hi*Wi).
    # c2 -> (512, 128) exactly fills a 128-wide MXU RHS; c3 -> (1024, 32).
    x2 = jnp.transpose(c2.reshape(n, ci2, hi2 * wi2), (1, 0, 2)).reshape(ci2, n * hi2 * wi2)
    x3 = jnp.transpose(c3.reshape(n, ci3, hi3 * wi3), (1, 0, 2)).reshape(ci3, n * hi3 * wi3)
    c4f = c4.reshape(n, c4c, hw)

    def full_spec(shape):
        return pl.BlockSpec(shape, lambda i: (0,) * len(shape))

    # Single fused step: conv(+BN scale) -> resize -> bias -> ReLU for both
    # branches, plus the c4 copy, all writing one fused (N, 160, 256) slab.
    # Total resident footprint ~2-3 MiB -> fits every generation's VMEM easily.
    # TODO(synk): on v7x a grid=(2,) megacore split with manual per-branch DMA
    # could be benchmarked against this single-step variant.
    fused = pl.pallas_call(
        _fused_kernel,
        out_shape=jax.ShapeDtypeStruct((n, c_total, hw), jnp.float32),
        grid=(1,),
        in_specs=[
            full_spec(x3.shape),            # x3  (Ci3, N*Hi3*Wi3) f32
            full_spec(x2.shape),            # x2  (Ci2, N*Hi2*Wi2) f32
            full_spec(c4f.shape),           # c4  (N, C4, Ho*Wo)   f32
            full_spec(prep["w3"].shape),    # w3  (Co, Ci3)        bf16
            full_spec(prep["w2"].shape),    # w2  (Co, Ci2)        bf16
            full_spec(prep["b3"].shape),    # b3  (Co, 1)          f32
            full_spec(prep["b2"].shape),    # b2  (Co, 1)          f32
            full_spec(prep["kt3"].shape),   # kt3 (Hi3*Wi3, Ho*Wo) bf16
            full_spec(prep["kt2"].shape),   # kt2 (Hi2*Wi2, Ho*Wo) bf16
        ],
        out_specs=full_spec((n, c_total, hw)),
        compiler_params=pltpu.CompilerParams(
            dimension_semantics=("arbitrary",)),
    )(x3, x2, c4f, prep["w3"], prep["w2"], prep["b3"], prep["b2"],
      prep["kt3"], prep["kt2"])

    # Free reshape back to NCHW (no transpose needed).
    return fused.reshape(n, c_total, ho, wo)


# ---------- plain-JAX reference (follows the PyTorch op order exactly) ----------
def _ref_branch(x, w, scale, bias, out_hw):
    _, _, hi, wi = x.shape
    ho, wo = out_hw
    rh = interp_matrix(ho, hi)
    rw = interp_matrix(wo, wi)
    xi = jnp.einsum("hH,ncHW->nchW", rh, x)
    xi = jnp.einsum("wW,nchW->nchw", rw, xi)
    z = jnp.einsum("oc,nchw->nohw", w, xi)  # 1x1 conv, no bias
    z = z * scale[None, :, None, None] + bias[None, :, None, None]
    return jnp.maximum(z, 0.0)


def feature_fused_reference(c2, c3, c4, params):
    ho, wo = c4.shape[2], c4.shape[3]
    b2 = _ref_branch(c2, params["w2"], params["scale2"], params["bias2"], (ho, wo))
    b3 = _ref_branch(c3, params["w3"], params["scale3"], params["bias3"], (ho, wo))
    return jnp.concatenate([c4, b3, b2], axis=1)


if __name__ == "__main__":
    key = jax.random.PRNGKey(0)
    ks = jax.random.split(key, 16)

    N = 2
    Ho = Wo = 16
    c2 = jax.random.normal(ks[0], (N, 512, 8, 8), jnp.float32)
    c3 = jax.random.normal(ks[1], (N, 1024, 4, 4), jnp.float32)
    c4 = jax.random.normal(ks[2], (N, 64, Ho, Wo), jnp.float32)

    Co = INTER_CHANNELS

    def bn_fold(kg, kb, km, kv, c):
        gamma = jax.random.uniform(kg, (c,), jnp.float32, 0.5, 1.5)
        beta = 0.1 * jax.random.normal(kb, (c,), jnp.float32)
        mean = 0.1 * jax.random.normal(km, (c,), jnp.float32)
        var = jax.random.uniform(kv, (c,), jnp.float32, 0.5, 1.5)
        s = gamma / jnp.sqrt(var + EPS)
        return s, beta - mean * s

    w2 = 0.05 * jax.random.normal(ks[3], (Co, 512), jnp.float32)
    w3 = 0.05 * jax.random.normal(ks[4], (Co, 1024), jnp.float32)
    scale2, bias2 = bn_fold(ks[5], ks[6], ks[7], ks[8], Co)
    scale3, bias3 = bn_fold(ks[9], ks[10], ks[11], ks[12], Co)

    params = dict(w2=w2, w3=w3, scale2=scale2, bias2=bias2,
                  scale3=scale3, bias3=bias3)

    # One-time operand prep (weights / shapes only) — cached across calls.
    prep = prepare_feature_fused_params(params, (8, 8), (4, 4), (Ho, Wo))
    prep = jax.tree_util.tree_map(jax.block_until_ready, prep)

    out = feature_fused_forward(c2, c3, c4, prep)
    out = jax.block_until_ready(out)

    ref = jax.block_until_ready(feature_fused_reference(c2, c3, c4, params))

    assert out.shape == (N, 64 + Co + Co, Ho, Wo), out.shape
    # Tolerance accounts for bf16 operands in BOTH matmuls (conv over 512/1024-
    # deep contractions and the bf16 resize), with f32 MXU accumulation.
    assert bool(jnp.allclose(out, ref, atol=8e-2, rtol=2e-2)), (
        "mismatch vs reference: max abs diff = "
        + str(float(jnp.max(jnp.abs(out - ref))))
    )

    print("KERNEL_OK")
</pallas_src>

<mosaic_0001>
module attributes {stable_mosaic.version = 11 : i64} {
  func.func @_fused_kernel(%arg0: i32, %arg1: memref<1024x32xf32, #tpu.memory_space<vmem>>, %arg2: memref<512x128xf32, #tpu.memory_space<vmem>>, %arg3: memref<2x64x256xf32, #tpu.memory_space<vmem>>, %arg4: memref<48x1024xbf16, #tpu.memory_space<vmem>>, %arg5: memref<48x512xbf16, #tpu.memory_space<vmem>>, %arg6: memref<48x1xf32, #tpu.memory_space<vmem>>, %arg7: memref<48x1xf32, #tpu.memory_space<vmem>>, %arg8: memref<16x256xbf16, #tpu.memory_space<vmem>>, %arg9: memref<64x256xbf16, #tpu.memory_space<vmem>>, %arg10: memref<2x160x256xf32, #tpu.memory_space<vmem>>) attributes {dimension_semantics = [#tpu.dimension_semantics<arbitrary>], iteration_bounds = array<i64: 1>, scalar_prefetch = 0 : i64, scratch_operands = 0 : i64, tpu.core_type = #tpu.core_type<tc>, window_params = [{pipeline_mode = #tpu.pipeline_mode<synchronous>, transform_indices = @transform_0, window_bounds = array<i64: 1024, 32>}, {pipeline_mode = #tpu.pipeline_mode<synchronous>, transform_indices = @transform_1, window_bounds = array<i64: 512, 128>}, {pipeline_mode = #tpu.pipeline_mode<synchronous>, transform_indices = @transform_2, window_bounds = array<i64: 2, 64, 256>}, {pipeline_mode = #tpu.pipeline_mode<synchronous>, transform_indices = @transform_3, window_bounds = array<i64: 48, 1024>}, {pipeline_mode = #tpu.pipeline_mode<synchronous>, transform_indices = @transform_4, window_bounds = array<i64: 48, 512>}, {pipeline_mode = #tpu.pipeline_mode<synchronous>, transform_indices = @transform_5, window_bounds = array<i64: 48, 1>}, {pipeline_mode = #tpu.pipeline_mode<synchronous>, transform_indices = @transform_6, window_bounds = array<i64: 48, 1>}, {pipeline_mode = #tpu.pipeline_mode<synchronous>, transform_indices = @transform_7, window_bounds = array<i64: 16, 256>}, {pipeline_mode = #tpu.pipeline_mode<synchronous>, transform_indices = @transform_8, window_bounds = array<i64: 64, 256>}, {pipeline_mode = #tpu.pipeline_mode<synchronous>, transform_indices = @transform_9, window_bounds = array<i64: 2, 160, 256>}]} {
    %c0 = arith.constant 0 : index
    %c0_0 = arith.constant 0 : index
    %c0_1 = arith.constant 0 : index
    %0 = vector.load %arg3[%c0, %c0_0, %c0_1] : memref<2x64x256xf32, #tpu.memory_space<vmem>>, vector<1x64x256xf32>
    %1 = vector.shape_cast %0 : vector<1x64x256xf32> to vector<64x256xf32>
    %c0_2 = arith.constant 0 : index
    %c0_3 = arith.constant 0 : index
    %c0_4 = arith.constant 0 : index
    %2 = vector.load %arg10[%c0_2, %c0_3, %c0_4] : memref<2x160x256xf32, #tpu.memory_space<vmem>>, vector<1x64x256xf32>
    %3 = vector.shape_cast %2 : vector<1x64x256xf32> to vector<64x256xf32>
    %4 = vector.shape_cast %1 : vector<64x256xf32> to vector<1x64x256xf32>
    tpu.vector_store %arg10[%c0_2, %c0_3, %c0_4], %4 {strides = array<i32>} : memref<2x160x256xf32, #tpu.memory_space<vmem>>, vector<1x64x256xf32>,
    %c1 = arith.constant 1 : index
    %c0_5 = arith.constant 0 : index
    %c0_6 = arith.constant 0 : index
    %5 = vector.load %arg3[%c1, %c0_5, %c0_6] : memref<2x64x256xf32, #tpu.memory_space<vmem>>, vector<1x64x256xf32>
    %6 = vector.shape_cast %5 : vector<1x64x256xf32> to vector<64x256xf32>
    %c1_7 = arith.constant 1 : index
    %c0_8 = arith.constant 0 : index
    %c0_9 = arith.constant 0 : index
    %7 = vector.load %arg10[%c1_7, %c0_8, %c0_9] : memref<2x160x256xf32, #tpu.memory_space<vmem>>, vector<1x64x256xf32>
    %8 = vector.shape_cast %7 : vector<1x64x256xf32> to vector<64x256xf32>
    %9 = vector.shape_cast %6 : vector<64x256xf32> to vector<1x64x256xf32>
    tpu.vector_store %arg10[%c1_7, %c0_8, %c0_9], %9 {strides = array<i32>} : memref<2x160x256xf32, #tpu.memory_space<vmem>>, vector<1x64x256xf32>,
    %c0_10 = arith.constant 0 : index
    %c0_11 = arith.constant 0 : index
    %10 = vector.load %arg4[%c0_10, %c0_11] : memref<48x1024xbf16, #tpu.memory_space<vmem>>, vector<48x1024xbf16>
    %c0_12 = arith.constant 0 : index
    %c0_13 = arith.constant 0 : index
    %11 = vector.load %arg1[%c0_12, %c0_13] : memref<1024x32xf32, #tpu.memory_space<vmem>>, vector<1024x32xf32>
    %12 = arith.truncf %11 : vector<1024x32xf32> to vector<1024x32xbf16>
    %cst = arith.constant dense<0.000000e+00> : vector<48x32xf32>
    %13 = tpu.matmul %10, %12, %cst {dimension_numbers = #tpu.dot_dimension_numbers<[1], [0], [0], [1], [0, 0, 1, 1], [], []>} : vector<48x1024xbf16>, vector<1024x32xbf16>, vector<48x32xf32> -> vector<48x32xf32>
    %14 = arith.truncf %13 : vector<48x32xf32> to vector<48x32xbf16>
    %15 = vector.extract_strided_slice %14 {offsets = [0, 0], sizes = [48, 16], strides = [1, 1]} : vector<48x32xbf16> to vector<48x16xbf16>
    %c0_14 = arith.constant 0 : index
    %c0_15 = arith.constant 0 : index
    %16 = vector.load %arg8[%c0_14, %c0_15] : memref<16x256xbf16, #tpu.memory_space<vmem>>, vector<16x256xbf16>
    %cst_16 = arith.constant dense<0.000000e+00> : vector<48x256xf32>
    %17 = tpu.matmul %15, %16, %cst_16 {dimension_numbers = #tpu.dot_dimension_numbers<[1], [0], [0], [1], [0, 0, 1, 1], [], []>} : vector<48x16xbf16>, vector<16x256xbf16>, vector<48x256xf32> -> vector<48x256xf32>
    %c0_17 = arith.constant 0 : index
    %c0_18 = arith.constant 0 : index
    %18 = vector.load %arg6[%c0_17, %c0_18] : memref<48x1xf32, #tpu.memory_space<vmem>>, vector<48x1xf32>
    %19 = vector.broadcast %18 : vector<48x1xf32> to vector<48x256xf32>
    %20 = arith.addf %17, %19 : vector<48x256xf32>
    %cst_19 = arith.constant 0.000000e+00 : f32
    %21 = vector.broadcast %cst_19 : f32 to vector<48x256xf32>
    %22 = arith.maximumf %20, %21 : vector<48x256xf32>
    %c0_20 = arith.constant 0 : index
    %c64 = arith.constant 64 : index
    %c0_21 = arith.constant 0 : index
    %23 = vector.load %arg10[%c0_20, %c64, %c0_21] : memref<2x160x256xf32, #tpu.memory_space<vmem>>, vector<1x48x256xf32>
    %24 = vector.shape_cast %23 : vector<1x48x256xf32> to vector<48x256xf32>
    %25 = vector.shape_cast %22 : vector<48x256xf32> to vector<1x48x256xf32>
    tpu.vector_store %arg10[%c0_20, %c64, %c0_21], %25 {strides = array<i32>} : memref<2x160x256xf32, #tpu.memory_space<vmem>>, vector<1x48x256xf32>,
    %26 = vector.extract_strided_slice %14 {offsets = [0, 16], sizes = [48, 16], strides = [1, 1]} : vector<48x32xbf16> to vector<48x16xbf16>
    %c0_22 = arith.constant 0 : index
    %c0_23 = arith.constant 0 : index
    %27 = vector.load %arg8[%c0_22, %c0_23] : memref<16x256xbf16, #tpu.memory_space<vmem>>, vector<16x256xbf16>
    %cst_24 = arith.constant dense<0.000000e+00> : vector<48x256xf32>
    %28 = tpu.matmul %26, %27, %cst_24 {dimension_numbers = #tpu.dot_dimension_numbers<[1], [0], [0], [1], [0, 0, 1, 1], [], []>} : vector<48x16xbf16>, vector<16x256xbf16>, vector<48x256xf32> -> vector<48x256xf32>
    %c0_25 = arith.constant 0 : index
    %c0_26 = arith.constant 0 : index
    %29 = vector.load %arg6[%c0_25, %c0_26] : memref<48x1xf32, #tpu.memory_space<vmem>>, vector<48x1xf32>
    %30 = vector.broadcast %29 : vector<48x1xf32> to vector<48x256xf32>
    %31 = arith.addf %28, %30 : vector<48x256xf32>
    %cst_27 = arith.constant 0.000000e+00 : f32
    %32 = vector.broadcast %cst_27 : f32 to vector<48x256xf32>
    %33 = arith.maximumf %31, %32 : vector<48x256xf32>
    %c1_28 = arith.constant 1 : index
    %c64_29 = arith.constant 64 : index
    %c0_30 = arith.constant 0 : index
    %34 = vector.load %arg10[%c1_28, %c64_29, %c0_30] : memref<2x160x256xf32, #tpu.memory_space<vmem>>, vector<1x48x256xf32>
    %35 = vector.shape_cast %34 : vector<1x48x256xf32> to vector<48x256xf32>
    %36 = vector.shape_cast %33 : vector<48x256xf32> to vector<1x48x256xf32>
    tpu.vector_store %arg10[%c1_28, %c64_29, %c0_30], %36 {strides = array<i32>} : memref<2x160x256xf32, #tpu.memory_space<vmem>>, vector<1x48x256xf32>,
    %c0_31 = arith.constant 0 : index
    %c0_32 = arith.constant 0 : index
    %37 = vector.load %arg5[%c0_31, %c0_32] : memref<48x512xbf16, #tpu.memory_space<vmem>>, vector<48x512xbf16>
    %c0_33 = arith.constant 0 : index
    %c0_34 = arith.constant 0 : index
    %38 = vector.load %arg2[%c0_33, %c0_34] : memref<512x128xf32, #tpu.memory_space<vmem>>, vector<512x128xf32>
    %39 = arith.truncf %38 : vector<512x128xf32> to vector<512x128xbf16>
    %cst_35 = arith.constant dense<0.000000e+00> : vector<48x128xf32>
    %40 = tpu.matmul %37, %39, %cst_35 {dimension_numbers = #tpu.dot_dimension_numbers<[1], [0], [0], [1], [0, 0, 1, 1], [], []>} : vector<48x512xbf16>, vector<512x128xbf16>, vector<48x128xf32> -> vector<48x128xf32>
    %41 = arith.truncf %40 : vector<48x128xf32> to vector<48x128xbf16>
    %42 = vector.extract_strided_slice %41 {offsets = [0, 0], sizes = [48, 64], strides = [1, 1]} : vector<48x128xbf16> to vector<48x64xbf16>
    %c0_36 = arith.constant 0 : index
    %c0_37 = arith.constant 0 : index
    %43 = vector.load %arg9[%c0_36, %c0_37] : memref<64x256xbf16, #tpu.memory_space<vmem>>, vector<64x256xbf16>
    %cst_38 = arith.constant dense<0.000000e+00> : vector<48x256xf32>
    %44 = tpu.matmul %42, %43, %cst_38 {dimension_numbers = #tpu.dot_dimension_numbers<[1], [0], [0], [1], [0, 0, 1, 1], [], []>} : vector<48x64xbf16>, vector<64x256xbf16>, vector<48x256xf32> -> vector<48x256xf32>
    %c0_39 = arith.constant 0 : index
    %c0_40 = arith.constant 0 : index
    %45 = vector.load %arg7[%c0_39, %c0_40] : memref<48x1xf32, #tpu.memory_space<vmem>>, vector<48x1xf32>
    %46 = vector.broadcast %45 : vector<48x1xf32> to vector<48x256xf32>
    %47 = arith.addf %44, %46 : vector<48x256xf32>
    %cst_41 = arith.constant 0.000000e+00 : f32
    %48 = vector.broadcast %cst_41 : f32 to vector<48x256xf32>
    %49 = arith.maximumf %47, %48 : vector<48x256xf32>
    %c0_42 = arith.constant 0 : index
    %c112 = arith.constant 112 : index
    %c0_43 = arith.constant 0 : index
    %50 = vector.load %arg10[%c0_42, %c112, %c0_43] : memref<2x160x256xf32, #tpu.memory_space<vmem>>, vector<1x48x256xf32>
    %51 = vector.shape_cast %50 : vector<1x48x256xf32> to vector<48x256xf32>
    %52 = vector.shape_cast %49 : vector<48x256xf32> to vector<1x48x256xf32>
    tpu.vector_store %arg10[%c0_42, %c112, %c0_43], %52 {strides = array<i32>} : memref<2x160x256xf32, #tpu.memory_space<vmem>>, vector<1x48x256xf32>,
    %53 = vector.extract_strided_slice %41 {offsets = [0, 64], sizes = [48, 64], strides = [1, 1]} : vector<48x128xbf16> to vector<48x64xbf16>
    %c0_44 = arith.constant 0 : index
    %c0_45 = arith.constant 0 : index
    %54 = vector.load %arg9[%c0_44, %c0_45] : memref<64x256xbf16, #tpu.memory_space<vmem>>, vector<64x256xbf16>
    %cst_46 = arith.constant dense<0.000000e+00> : vector<48x256xf32>
    %55 = tpu.matmul %53, %54, %cst_46 {dimension_numbers = #tpu.dot_dimension_numbers<[1], [0], [0], [1], [0, 0, 1, 1], [], []>} : vector<48x64xbf16>, vector<64x256xbf16>, vector<48x256xf32> -> vector<48x256xf32>
    %c0_47 = arith.constant 0 : index
    %c0_48 = arith.constant 0 : index
    %56 = vector.load %arg7[%c0_47, %c0_48] : memref<48x1xf32, #tpu.memory_space<vmem>>, vector<48x1xf32>
    %57 = vector.broadcast %56 : vector<48x1xf32> to vector<48x256xf32>
    %58 = arith.addf %55, %57 : vector<48x256xf32>
    %cst_49 = arith.constant 0.000000e+00 : f32
    %59 = vector.broadcast %cst_49 : f32 to vector<48x256xf32>
    %60 = arith.maximumf %58, %59 : vector<48x256xf32>
    %c1_50 = arith.constant 1 : index
    %c112_51 = arith.constant 112 : index
    %c0_52 = arith.constant 0 : index
    %61 = vector.load %arg10[%c1_50, %c112_51, %c0_52] : memref<2x160x256xf32, #tpu.memory_space<vmem>>, vector<1x48x256xf32>
    %62 = vector.shape_cast %61 : vector<1x48x256xf32> to vector<48x256xf32>
    %63 = vector.shape_cast %60 : vector<48x256xf32> to vector<1x48x256xf32>
    tpu.vector_store %arg10[%c1_50, %c112_51, %c0_52], %63 {strides = array<i32>} : memref<2x160x256xf32, #tpu.memory_space<vmem>>, vector<1x48x256xf32>,
    return
  }
  func.func @transform_0(%arg0: i32) -> (i32, i32) {
    %c0_i32 = arith.constant 0 : i32
    %c0_i32_0 = arith.constant 0 : i32
    %c0_i32_1 = arith.constant 0 : i32
    return %c0_i32, %c0_i32_0 : i32, i32
  }
  func.func @transform_1(%arg0: i32) -> (i32, i32) {
    %c0_i32 = arith.constant 0 : i32
    %c0_i32_0 = arith.constant 0 : i32
    %c0_i32_1 = arith.constant 0 : i32
    return %c0_i32, %c0_i32_0 : i32, i32
  }
  func.func @transform_2(%arg0: i32) -> (i32, i32, i32) {
    %c0_i32 = arith.constant 0 : i32
    %c0_i32_0 = arith.constant 0 : i32
    %c0_i32_1 = arith.constant 0 : i32
    %c0_i32_2 = arith.constant 0 : i32
    return %c0_i32, %c0_i32_0, %c0_i32_1 : i32, i32, i32
  }
  func.func @transform_3(%arg0: i32) -> (i32, i32) {
    %c0_i32 = arith.constant 0 : i32
    %c0_i32_0 = arith.constant 0 : i32
    %c0_i32_1 = arith.constant 0 : i32
    return %c0_i32, %c0_i32_0 : i32, i32
  }
  func.func @transform_4(%arg0: i32) -> (i32, i32) {
    %c0_i32 = arith.constant 0 : i32
    %c0_i32_0 = arith.constant 0 : i32
    %c0_i32_1 = arith.constant 0 : i32
    return %c0_i32, %c0_i32_0 : i32, i32
  }
  func.func @transform_5(%arg0: i32) -> (i32, i32) {
    %c0_i32 = arith.constant 0 : i32
    %c0_i32_0 = arith.constant 0 : i32
    %c0_i32_1 = arith.constant 0 : i32
    return %c0_i32, %c0_i32_0 : i32, i32
  }
  func.func @transform_6(%arg0: i32) -> (i32, i32) {
    %c0_i32 = arith.constant 0 : i32
    %c0_i32_0 = arith.constant 0 : i32
    %c0_i32_1 = arith.constant 0 : i32
    return %c0_i32, %c0_i32_0 : i32, i32
  }
  func.func @transform_7(%arg0: i32) -> (i32, i32) {
    %c0_i32 = arith.constant 0 : i32
    %c0_i32_0 = arith.constant 0 : i32
    %c0_i32_1 = arith.constant 0 : i32
    return %c0_i32, %c0_i32_0 : i32, i32
  }
  func.func @transform_8(%arg0: i32) -> (i32, i32) {
    %c0_i32 = arith.constant 0 : i32
    %c0_i32_0 = arith.constant 0 : i32
    %c0_i32_1 = arith.constant 0 : i32
    return %c0_i32, %c0_i32_0 : i32, i32
  }
  func.func @transform_9(%arg0: i32) -> (i32, i32, i32) {
    %c0_i32 = arith.constant 0 : i32
    %c0_i32_0 = arith.constant 0 : i32
    %c0_i32_1 = arith.constant 0 : i32
    %c0_i32_2 = arith.constant 0 : i32
    return %c0_i32, %c0_i32_0, %c0_i32_1 : i32, i32, i32
  }
}

</mosaic_0001>

<bundles_post_ra>
// kernel: tpu_custom_call.1
= control target key start
LH: loop header
LB: loop body
LE: loop exit
PB: predicated region body
PF: predicated region fallthrough
CT: control target
= control target key end

     0   :  { %s3084_s0 = inlined_call_operand.vmem [shape: f32[1024,32], index: 0, kind: input, shape index: {}]   ;;  %s3085_s1 = inlined_call_operand.vmem [shape: f32[512,128], index: 1, kind: input, shape index: {}]   ;;  %s3086_s2 = inlined_call_operand.vmem [shape: f32[2,64,256], index: 2, kind: input, shape index: {}]   ;;  %s3087_s3 = inlined_call_operand.vmem [shape: bf16[48,1024], index: 3, kind: input, shape index: {}]   ;;  %s3088_s4 = inlined_call_operand.vmem [shape: bf16[48,512], index: 4, kind: input, shape index: {}]   ;;  %s3089_s5 = inlined_call_operand.vmem [shape: f32[48,1], index: 5, kind: input, shape index: {}]   ;;  %s3090_s6 = inlined_call_operand.vmem [shape: f32[48,1], index: 6, kind: input, shape index: {}]   ;;  %s3091_s7 = inlined_call_operand.vmem [shape: bf16[16,256], index: 7, kind: input, shape index: {}]   ;;  %s3092_s8 = inlined_call_operand.vmem [shape: bf16[64,256], index: 8, kind: input, shape index: {}]   ;;  %s3093_s9 = inlined_call_operand.hbm [shape: f32[2,160,256], index: 9, kind: output, shape index: {}]  }
   0x1   :  { %v154_v0 = vld [vmem:[%s3084_s0 + $0xf0] sm:$0xff]  ;;  %v155_v1 = vld [vmem:[%s3084_s0 + $0xf8] sm:$0xff]  ;;  %v152_v11 = vld [vmem:[%s3084_s0 + $0xe0] sm:$0xff] }
   0x2   :  { %v186_v2 = vld [vmem:[%s3084_s0 + $0x1f0] sm:$0xff]  ;;  %v267_v3 = vpack.c.bf16 %v155_v1, %v154_v0  ;;  %v187_v4 = vld [vmem:[%s3084_s0 + $0x1f8] sm:$0xff]  ;;  %v153_v13 = vld [vmem:[%s3084_s0 + $0xe8] sm:$0xff] }
   0x3   :  { %v138_v5 = vld [vmem:[%s3084_s0 + $0x70] sm:$0xff]  ;;  %v139_v6 = vld [vmem:[%s3084_s0 + $0x78] sm:$0xff]  ;;  %v283_v7 = vpack.c.bf16 %v187_v4, %v186_v2  ;;  %v184_v14 = vld [vmem:[%s3084_s0 + $0x1e0] sm:$0xff]  ;;  %v266_v16 = vpack.c.bf16 %v153_v13, %v152_v11 }
   0x4   :  { %v259_v8 = vpack.c.bf16 %v139_v6, %v138_v5  ;;  %v170_v9 = vld [vmem:[%s3084_s0 + $0x170] sm:$0xff]  ;;  %v171_v10 = vld [vmem:[%s3084_s0 + $0x178] sm:$0xff]  ;;  %1720 = vmatprep.subr.bf16.mxu0 %v267_v3  ;;  %v185_v15 = vld [vmem:[%s3084_s0 + $0x1e8] sm:$0xff] }
   0x5   :  { %v275_v12 = vpack.c.bf16 %v171_v10, %v170_v9  ;;  %1754 = vmatprep.subr.bf16.mxu1 %v283_v7  ;;  %v282_v17 = vpack.c.bf16 %v185_v15, %v184_v14  ;;  %v136_v18 = vld [vmem:[%s3084_s0 + $0x60] sm:$0xff]  ;;  %v137_v19 = vld [vmem:[%s3084_s0 + $0x68] sm:$0xff]  ;;  %v150_v23 = vld [vmem:[%s3084_s0 + $0xd0] sm:$0xff] }
   0x6   :  { %1721 = vmatpush3.bf16.msra.mxu0 %v259_v8  ;;  %v168_v20 = vld [vmem:[%s3084_s0 + $0x160] sm:$0xff]  ;;  %v258_v21 = vpack.c.bf16 %v137_v19, %v136_v18  ;;  %v169_v22 = vld [vmem:[%s3084_s0 + $0x168] sm:$0xff]  ;;  %v151_v24 = vld [vmem:[%s3084_s0 + $0xd8] sm:$0xff] }
   0x7   :  { %1755 = vmatpush3.bf16.msra.mxu1 %v275_v12  ;;  %1722 = vmatprep.subr.bf16.mxu0 %v266_v16  ;;  %v274_v25 = vpack.c.bf16 %v169_v22, %v168_v20  ;;  %v265_v26 = vpack.c.bf16 %v151_v24, %v150_v23  ;;  %v182_v27 = vld [vmem:[%s3084_s0 + $0x1d0] sm:$0xff]  ;;  %v183_v28 = vld [vmem:[%s3084_s0 + $0x1d8] sm:$0xff]  ;;  %v148_v35 = vld [vmem:[%s3084_s0 + $0xc0] sm:$0xff] }
   0x8   :  { %1756 = vmatprep.subr.bf16.mxu1 %v282_v17  ;;  %v134_v29 = vld [vmem:[%s3084_s0 + $0x50] sm:$0xff]  ;;  %v281_v30 = vpack.c.bf16 %v183_v28, %v182_v27  ;;  %v135_v31 = vld [vmem:[%s3084_s0 + $0x58] sm:$0xff]  ;;  %v149_v36 = vld [vmem:[%s3084_s0 + $0xc8] sm:$0xff] }
   0x9   :  { %v166_v32 = vld [vmem:[%s3084_s0 + $0x150] sm:$0xff]  ;;  %v167_v33 = vld [vmem:[%s3084_s0 + $0x158] sm:$0xff]  ;;  %v257_v34 = vpack.c.bf16 %v135_v31, %v134_v29  ;;  %v180_v37 = vld [vmem:[%s3084_s0 + $0x1c0] sm:$0xff]  ;;  %v264_v39 = vpack.c.bf16 %v149_v36, %v148_v35 }
   0xa   :  { %1723 = vmatpush3.bf16.msra.mxu0 %v258_v21  ;;  %v273_v38 = vpack.c.bf16 %v167_v33, %v166_v32  ;;  %v181_v40 = vld [vmem:[%s3084_s0 + $0x1c8] sm:$0xff]  ;;  %v132_v41 = vld [vmem:[%s3084_s0 + $0x40] sm:$0xff]  ;;  %v146_v46 = vld [vmem:[%s3084_s0 + $0xb0] sm:$0xff] }
   0xb   :  { %1757 = vmatpush3.bf16.msra.mxu1 %v274_v25  ;;  %1724 = vmatprep.subr.bf16.mxu0 %v265_v26  ;;  %v133_v42 = vld [vmem:[%s3084_s0 + $0x48] sm:$0xff]  ;;  %v280_v43 = vpack.c.bf16 %v181_v40, %v180_v37  ;;  %v164_v44 = vld [vmem:[%s3084_s0 + $0x140] sm:$0xff]  ;;  %v147_v47 = vld [vmem:[%s3084_s0 + $0xb8] sm:$0xff] }
   0xc   :  { %1758 = vmatprep.subr.bf16.mxu1 %v281_v30  ;;  %v165_v45 = vld [vmem:[%s3084_s0 + $0x148] sm:$0xff]  ;;  %v178_v48 = vld [vmem:[%s3084_s0 + $0x1b0] sm:$0xff]  ;;  %v179_v49 = vld [vmem:[%s3084_s0 + $0x1b8] sm:$0xff]  ;;  %v256_v50 = vpack.c.bf16 %v133_v42, %v132_v41  ;;  %v263_v52 = vpack.c.bf16 %v147_v47, %v146_v46 }
   0xd   :  { %v272_v51 = vpack.c.bf16 %v165_v45, %v164_v44  ;;  %v130_v53 = vld [vmem:[%s3084_s0 + $0x30] sm:$0xff]  ;;  %v131_v54 = vld [vmem:[%s3084_s0 + $0x38] sm:$0xff]  ;;  %v279_v56 = vpack.c.bf16 %v179_v49, %v178_v48  ;;  %v144_v58 = vld [vmem:[%s3084_s0 + $0xa0] sm:$0xff] }
   0xe   :  { %1725 = vmatpush3.bf16.msra.mxu0 %v257_v34  ;;  %v162_v55 = vld [vmem:[%s3084_s0 + $0x130] sm:$0xff]  ;;  %v163_v57 = vld [vmem:[%s3084_s0 + $0x138] sm:$0xff]  ;;  %v145_v59 = vld [vmem:[%s3084_s0 + $0xa8] sm:$0xff]  ;;  %v255_v62 = vpack.c.bf16 %v131_v54, %v130_v53 }
   0xf   :  { %1759 = vmatpush3.bf16.msra.mxu1 %v273_v38  ;;  %1726 = vmatprep.subr.bf16.mxu0 %v264_v39  ;;  %v176_v60 = vld [vmem:[%s3084_s0 + $0x1a0] sm:$0xff]  ;;  %v177_v61 = vld [vmem:[%s3084_s0 + $0x1a8] sm:$0xff]  ;;  %v271_v63 = vpack.c.bf16 %v163_v57, %v162_v55  ;;  %v262_v0 = vpack.c.bf16 %v145_v59, %v144_v58  ;;  %v142_v6 = vld [vmem:[%s3084_s0 + $0x90] sm:$0xff] }
  0x10   :  { %1760 = vmatprep.subr.bf16.mxu1 %v280_v43  ;;  %v128_v1 = vld [vmem:[%s3084_s0 + $0x20] sm:$0xff]  ;;  %v129_v2 = vld [vmem:[%s3084_s0 + $0x28] sm:$0xff]  ;;  %v278_v4 = vpack.c.bf16 %v177_v61, %v176_v60  ;;  %v143_v7 = vld [vmem:[%s3084_s0 + $0x98] sm:$0xff] }
  0x11   :  { %v160_v3 = vld [vmem:[%s3084_s0 + $0x120] sm:$0xff]  ;;  %v161_v5 = vld [vmem:[%s3084_s0 + $0x128] sm:$0xff]  ;;  %v174_v8 = vld [vmem:[%s3084_s0 + $0x190] sm:$0xff]  ;;  %v254_v11 = vpack.c.bf16 %v129_v2, %v128_v1  ;;  %v261_v16 = vpack.c.bf16 %v143_v7, %v142_v6 }
  0x12   :  { %1727 = vmatpush3.bf16.msra.mxu0 %v256_v50  ;;  %v175_v9 = vld [vmem:[%s3084_s0 + $0x198] sm:$0xff]  ;;  %v126_v10 = vld [vmem:[%s3084_s0 + $0x10] sm:$0xff]  ;;  %v270_v15 = vpack.c.bf16 %v161_v5, %v160_v3  ;;  %v140_v17 = vld [vmem:[%s3084_s0 + $0x80] sm:$0xff] }
  0x13   :  { %1761 = vmatpush3.bf16.msra.mxu1 %v272_v51  ;;  %1728 = vmatprep.subr.bf16.mxu0 %v263_v52  ;;  %v127_v12 = vld [vmem:[%s3084_s0 + $0x18] sm:$0xff]  ;;  %v158_v13 = vld [vmem:[%s3084_s0 + $0x110] sm:$0xff]  ;;  %v2217_v18 = vld [vmem:[%s3087_s3] sm:$0xff]  ;;  %v277_v20 = vpack.c.bf16 %v175_v9, %v174_v8 }
  0x14   :  { %1762 = vmatprep.subr.bf16.mxu1 %v279_v56  ;;  %v159_v14 = vld [vmem:[%s3084_s0 + $0x118] sm:$0xff]  ;;  %v2222_v19 = vld [vmem:[%s3087_s3 + $0x20] sm:$0xff]  ;;  %v141_v21 = vld [vmem:[%s3084_s0 + $0x88] sm:$0xff]  ;;  %v253_v28 = vpack.c.bf16 %v127_v12, %v126_v10 }
  0x15   :  { %v1653_v22 = vcombine.high %v2217_v18, %v2222_v19  ;;  %v2232_v23 = vld [vmem:[%s3087_s3 + $0x8] sm:$0xff]  ;;  %v172_v25 = vld [vmem:[%s3084_s0 + $0x180] sm:$0xff]  ;;  %v269_v29 = vpack.c.bf16 %v159_v14, %v158_v13  ;;  %v260_v30 = vpack.c.bf16 %v141_v21, %v140_v17  ;;  %v218_v36 = vld [vmem:[%s3084_s0 + $0x2f0] sm:$0xff]  ;;  %v1652_v51 = vcombine.low %v2217_v18, %v2222_v19 }
  0x16   :  { %1729 = vmatpush3.bf16.msra.mxu0 %v255_v62  ;;  %v2237_v24 = vld [vmem:[%s3087_s3 + $0x28] sm:$0xff]  ;;  %v124_v31 = vld [vmem:[%s3084_s0] sm:$0xff]  ;;  %v219_v37 = vld [vmem:[%s3084_s0 + $0x2f8] sm:$0xff] }
  0x17   :  { %1763 = vmatpush3.bf16.msra.mxu1 %v271_v63  ;;  %1730 = vmatprep.subr.bf16.mxu0 %v262_v0  ;;  %v173_v26 = vld [vmem:[%s3084_s0 + $0x188] sm:$0xff]  ;;  %v1655_v27 = vcombine.high %v2232_v23, %v2237_v24  ;;  %v156_v33 = vld [vmem:[%s3084_s0 + $0x100] sm:$0xff]  ;;  %v250_v38 = vld [vmem:[%s3084_s0 + $0x3f0] sm:$0xff]  ;;  %v299_v43 = vpack.c.bf16 %v219_v37, %v218_v36  ;;  %v1654_v55 = vcombine.low %v2232_v23, %v2237_v24 }
  0x18   :  { %1764 = vmatprep.subr.bf16.mxu1 %v278_v4  ;;  %468 = vmatprep.mubr.bf16.mxu0 %v1653_v22  ;;  %v125_v32 = vld [vmem:[%s3084_s0 + $0x8] sm:$0xff]  ;;  %v276_v34 = vpack.c.bf16 %v173_v26, %v172_v25  ;;  %v251_v39 = vld [vmem:[%s3084_s0 + $0x3f8] sm:$0xff]  ;;  %v202_v41 = vld [vmem:[%s3084_s0 + $0x270] sm:$0xff] }
  0x19   :  { %v157_v35 = vld [vmem:[%s3084_s0 + $0x108] sm:$0xff]  ;;  %525 = vmatprep.mubr.bf16.mxu1 %v1655_v27  ;;  %v252_v40 = vpack.c.bf16 %v125_v32, %v124_v31  ;;  %v203_v44 = vld [vmem:[%s3084_s0 + $0x278] sm:$0xff]  ;;  %v234_v45 = vld [vmem:[%s3084_s0 + $0x370] sm:$0xff]  ;;  %v315_v47 = vpack.c.bf16 %v251_v39, %v250_v38 }
  0x1a   :  { %1731 = vmatpush3.bf16.msra.mxu0 %v254_v11  ;;  %v268_v42 = vpack.c.bf16 %v157_v35, %v156_v33  ;;  %v235_v46 = vld [vmem:[%s3084_s0 + $0x378] sm:$0xff]  ;;  %v216_v48 = vld [vmem:[%s3084_s0 + $0x2e0] sm:$0xff]  ;;  %v217_v49 = vld [vmem:[%s3084_s0 + $0x2e8] sm:$0xff]  ;;  %v291_v56 = vpack.c.bf16 %v203_v44, %v202_v41 }
  0x1b   :  { %1765 = vmatpush3.bf16.msra.mxu1 %v270_v15  ;;  %1732 = vmatprep.subr.bf16.mxu0 %v261_v16  ;;  %v248_v50 = vld [vmem:[%s3084_s0 + $0x3e0] sm:$0xff]  ;;  %v249_v52 = vld [vmem:[%s3084_s0 + $0x3e8] sm:$0xff]  ;;  %v307_v59 = vpack.c.bf16 %v235_v46, %v234_v45  ;;  %v298_v60 = vpack.c.bf16 %v217_v49, %v216_v48  ;;  %v214_v2 = vld [vmem:[%s3084_s0 + $0x2d0] sm:$0xff] }
  0x1c   :  { %1766 = vmatprep.subr.bf16.mxu1 %v277_v20  ;;  %v2300_v53 = vld [vmem:[%s3087_s3 + $0x40] sm:$0xff]  ;;  %v2312_v57 = vld [vmem:[%s3087_s3 + $0x48] sm:$0xff]  ;;  %v314_v0 = vpack.c.bf16 %v249_v52, %v248_v50  ;;  %v215_v3 = vld [vmem:[%s3084_s0 + $0x2d8] sm:$0xff] }
  0x1d   :  { %v2305_v54 = vld [vmem:[%s3087_s3 + $0x60] sm:$0xff]  ;;  %v2317_v58 = vld [vmem:[%s3087_s3 + $0x68] sm:$0xff]  ;;  %v246_v5 = vld [vmem:[%s3084_s0 + $0x3d0] sm:$0xff]  ;;  %v297_v11 = vpack.c.bf16 %v215_v3, %v214_v2 }
  0x1e   :  { %1733 = vmatpush3.bf16.msra.mxu0 %v253_v28  ;;  %v200_v61 = vld [vmem:[%s3084_s0 + $0x260] sm:$0xff]  ;;  %v201_v62 = vld [vmem:[%s3084_s0 + $0x268] sm:$0xff]  ;;  %v1661_v4 = vcombine.high %v2300_v53, %v2305_v54  ;;  %v247_v6 = vld [vmem:[%s3084_s0 + $0x3d8] sm:$0xff]  ;;  %v1663_v7 = vcombine.high %v2312_v57, %v2317_v58  ;;  %v1660_v19 = vcombine.low %v2300_v53, %v2305_v54  ;;  %v1662_v24 = vcombine.low %v2312_v57, %v2317_v58 }
  0x1f   :  { %1767 = vmatpush3.bf16.msra.mxu1 %v269_v29  ;;  %1734 = vmatprep.subr.bf16.mxu0 %v260_v30  ;;  %v232_v63 = vld [vmem:[%s3084_s0 + $0x360] sm:$0xff]  ;;  %v233_v1 = vld [vmem:[%s3084_s0 + $0x368] sm:$0xff]  ;;  %v290_v8 = vpack.c.bf16 %v201_v62, %v200_v61  ;;  %v198_v9 = vld [vmem:[%s3084_s0 + $0x250] sm:$0xff]  ;;  %v313_v15 = vpack.c.bf16 %v247_v6, %v246_v5 }
  0x20   :  { %1768 = vmatprep.subr.bf16.mxu1 %v276_v34  ;;  %v306_v10 = vpack.c.bf16 %v233_v1, %v232_v63  ;;  %v199_v12 = vld [vmem:[%s3084_s0 + $0x258] sm:$0xff]  ;;  %v230_v13 = vld [vmem:[%s3084_s0 + $0x350] sm:$0xff]  ;;  %v212_v16 = vld [vmem:[%s3084_s0 + $0x2c0] sm:$0xff] }
  0x21   :  { %v231_v14 = vld [vmem:[%s3084_s0 + $0x358] sm:$0xff]  ;;  %v213_v17 = vld [vmem:[%s3084_s0 + $0x2c8] sm:$0xff]  ;;  %v244_v18 = vld [vmem:[%s3084_s0 + $0x3c0] sm:$0xff]  ;;  %v289_v23 = vpack.c.bf16 %v199_v12, %v198_v9 }
  0x22   :  { %1735 = vmatpush3.bf16.msra.mxu0 %v252_v40  ;;  %v245_v20 = vld [vmem:[%s3084_s0 + $0x3c8] sm:$0xff]  ;;  %v2376_v21 = vld [vmem:[%s3087_s3 + $0x80] sm:$0xff]  ;;  %v305_v27 = vpack.c.bf16 %v231_v14, %v230_v13  ;;  %v296_v28 = vpack.c.bf16 %v213_v17, %v212_v16  ;;  %v210_v34 = vld [vmem:[%s3084_s0 + $0x2b0] sm:$0xff] }
  0x23   :  { %1769 = vmatpush3.bf16.msra.mxu1 %v268_v42  ;;  %1788 = vmatprep.subr.bf16.mxu0 %v299_v43  ;;  %v2381_v22 = vld [vmem:[%s3087_s3 + $0xa0] sm:$0xff]  ;;  %v2388_v25 = vld [vmem:[%s3087_s3 + $0x88] sm:$0xff]  ;;  %v312_v32 = vpack.c.bf16 %v245_v20, %v244_v18  ;;  %v211_v35 = vld [vmem:[%s3084_s0 + $0x2b8] sm:$0xff] }
  0x24   :  { %1822 = vmatprep.subr.bf16.mxu1 %v315_v47  ;;  %v2393_v26 = vld [vmem:[%s3087_s3 + $0xa8] sm:$0xff]  ;;  %v196_v29 = vld [vmem:[%s3084_s0 + $0x240] sm:$0xff]  ;;  %v1669_v36 = vcombine.high %v2376_v21, %v2381_v22  ;;  %v242_v37 = vld [vmem:[%s3084_s0 + $0x3b0] sm:$0xff]  ;;  %v295_v44 = vpack.c.bf16 %v211_v35, %v210_v34  ;;  %v1668_v52 = vcombine.low %v2376_v21, %v2381_v22 }
  0x25   :  { %469 = vmatmul.mubr.bf16.vlgmr.msra.gmra.mxu0 %v1652_v51  ;;  %v197_v30 = vld [vmem:[%s3084_s0 + $0x248] sm:$0xff]  ;;  %v228_v31 = vld [vmem:[%s3084_s0 + $0x340] sm:$0xff]  ;;  %v243_v38 = vld [vmem:[%s3084_s0 + $0x3b8] sm:$0xff]  ;;  %v1671_v39 = vcombine.high %v2388_v25, %v2393_v26  ;;  %v1670_v58 = vcombine.low %v2388_v25, %v2393_v26 }
  0x26   :  { %526 = vmatmul.mubr.bf16.vlgmr.msra.gmra.mxu1 %v1654_v55  ;;  %1789 = vmatpush3.bf16.msra.mxu0 %v291_v56  ;;  %v229_v33 = vld [vmem:[%s3084_s0 + $0x348] sm:$0xff]  ;;  %v288_v40 = vpack.c.bf16 %v197_v30, %v196_v29  ;;  %v194_v41 = vld [vmem:[%s3084_s0 + $0x230] sm:$0xff]  ;;  %v195_v42 = vld [vmem:[%s3084_s0 + $0x238] sm:$0xff]  ;;  %v311_v48 = vpack.c.bf16 %v243_v38, %v242_v37 }
  0x27   :  { %1823 = vmatpush3.bf16.msra.mxu1 %v307_v59  ;;  %1790 = vmatprep.subr.bf16.mxu0 %v298_v60  ;;  %v304_v43 = vpack.c.bf16 %v229_v33, %v228_v31  ;;  %v226_v45 = vld [vmem:[%s3084_s0 + $0x330] sm:$0xff]  ;;  %v227_v46 = vld [vmem:[%s3084_s0 + $0x338] sm:$0xff]  ;;  %v208_v47 = vld [vmem:[%s3084_s0 + $0x2a0] sm:$0xff]  ;;  %v287_v57 = vpack.c.bf16 %v195_v42, %v194_v41 }
  0x28   :  { %1824 = vmatprep.subr.bf16.mxu1 %v314_v0  ;;  %476 = vmatprep.mubr.bf16.mxu0 %v1661_v4  ;;  %v209_v49 = vld [vmem:[%s3084_s0 + $0x2a8] sm:$0xff]  ;;  %v240_v50 = vld [vmem:[%s3084_s0 + $0x3a0] sm:$0xff]  ;;  %v2458_v55 = vld [vmem:[%s3087_s3 + $0x10] sm:$0xff]  ;;  %v303_v62 = vpack.c.bf16 %v227_v46, %v226_v45 }
  0x29   :  { %533 = vmatprep.mubr.bf16.mxu1 %v1663_v7  ;;  %v241_v51 = vld [vmem:[%s3084_s0 + $0x3a8] sm:$0xff]  ;;  %v192_v53 = vld [vmem:[%s3084_s0 + $0x220] sm:$0xff]  ;;  %v2463_v56 = vld [vmem:[%s3087_s3 + $0x30] sm:$0xff]  ;;  %v294_v63 = vpack.c.bf16 %v209_v49, %v208_v47 }
  0x2a   :  { %1791 = vmatpush3.bf16.msra.mxu0 %v290_v8  ;;  %v193_v54 = vld [vmem:[%s3084_s0 + $0x228] sm:$0xff]  ;;  %v224_v59 = vld [vmem:[%s3084_s0 + $0x320] sm:$0xff]  ;;  %v2473_v60 = vld [vmem:[%s3087_s3 + $0x18] sm:$0xff]  ;;  %v310_v3 = vpack.c.bf16 %v241_v51, %v240_v50  ;;  %v1657_v6 = vcombine.high %v2458_v55, %v2463_v56 }
  0x2b   :  { %1825 = vmatpush3.bf16.msra.mxu1 %v306_v10  ;;  %1792 = vmatprep.subr.bf16.mxu0 %v297_v11  ;;  %v2478_v61 = vld [vmem:[%s3087_s3 + $0x38] sm:$0xff]  ;;  %v225_v0 = vld [vmem:[%s3084_s0 + $0x328] sm:$0xff]  ;;  %v206_v1 = vld [vmem:[%s3084_s0 + $0x290] sm:$0xff]  ;;  %v286_v10 = vpack.c.bf16 %v193_v54, %v192_v53 }
  0x2c   :  { %1826 = vmatprep.subr.bf16.mxu1 %v313_v15  ;;  %v207_v2 = vld [vmem:[%s3084_s0 + $0x298] sm:$0xff]  ;;  %v238_v4 = vld [vmem:[%s3084_s0 + $0x390] sm:$0xff]  ;;  %v1659_v9 = vcombine.high %v2473_v60, %v2478_v61  ;;  %v204_v13 = vld [vmem:[%s3084_s0 + $0x280] sm:$0xff]  ;;  %v302_v15 = vpack.c.bf16 %v225_v0, %v224_v59 }
  0x2d   :  { %477 = vmatmul.mubr.bf16.gmra.mxu0 %v1660_v19  ;;  %v239_v5 = vld [vmem:[%s3084_s0 + $0x398] sm:$0xff]  ;;  %v190_v7 = vld [vmem:[%s3084_s0 + $0x210] sm:$0xff]  ;;  %v205_v14 = vld [vmem:[%s3084_s0 + $0x288] sm:$0xff]  ;;  %v293_v16 = vpack.c.bf16 %v207_v2, %v206_v1 }
  0x2e   :  { %1793 = vmatpush3.bf16.msra.mxu0 %v289_v23  ;;  %534 = vmatmul.mubr.bf16.gmra.mxu1 %v1662_v24  ;;  %v191_v8 = vld [vmem:[%s3084_s0 + $0x218] sm:$0xff]  ;;  %v222_v11 = vld [vmem:[%s3084_s0 + $0x310] sm:$0xff]  ;;  %v236_v17 = vld [vmem:[%s3084_s0 + $0x380] sm:$0xff]  ;;  %v309_v19 = vpack.c.bf16 %v239_v5, %v238_v4  ;;  %v292_v24 = vpack.c.bf16 %v205_v14, %v204_v13 }
  0x2f   :  { %1827 = vmatpush3.bf16.msra.mxu1 %v305_v27  ;;  %1794 = vmatprep.subr.bf16.mxu0 %v296_v28  ;;  %v223_v12 = vld [vmem:[%s3084_s0 + $0x318] sm:$0xff]  ;;  %v237_v18 = vld [vmem:[%s3084_s0 + $0x388] sm:$0xff]  ;;  %v188_v20 = vld [vmem:[%s3084_s0 + $0x200] sm:$0xff]  ;;  %v285_v22 = vpack.c.bf16 %v191_v8, %v190_v7 }
  0x30   :  { %1828 = vmatprep.subr.bf16.mxu1 %v312_v32  ;;  %484 = vmatprep.mubr.bf16.mxu0 %v1669_v36  ;;  %v189_v21 = vld [vmem:[%s3084_s0 + $0x208] sm:$0xff]  ;;  %v301_v23 = vpack.c.bf16 %v223_v12, %v222_v11  ;;  %v308_v25 = vpack.c.bf16 %v237_v18, %v236_v17  ;;  %v220_v26 = vld [vmem:[%s3084_s0 + $0x300] sm:$0xff] }
  0x31   :  { %541 = vmatprep.mubr.bf16.mxu1 %v1671_v39  ;;  %v221_v27 = vld [vmem:[%s3084_s0 + $0x308] sm:$0xff] }
  0x32   :  { %1795 = vmatpush3.bf16.msra.mxu0 %v288_v40 }
  0x33   :  { %1829 = vmatpush3.bf16.msra.mxu1 %v304_v43  ;;  %1796 = vmatprep.subr.bf16.mxu0 %v295_v44 }
  0x34   :  { %1830 = vmatprep.subr.bf16.mxu1 %v311_v48 }
  0x35   :  { %485 = vmatmul.mubr.bf16.gmra.mxu0 %v1668_v52 }
  0x36   :  { %1797 = vmatpush3.bf16.msra.mxu0 %v287_v57  ;;  %542 = vmatmul.mubr.bf16.gmra.mxu1 %v1670_v58 }
  0x37   :  { %1831 = vmatpush3.bf16.msra.mxu1 %v303_v62  ;;  %1798 = vmatprep.subr.bf16.mxu0 %v294_v63 }
  0x38   :  { %1832 = vmatprep.subr.bf16.mxu1 %v310_v3  ;;  %582 = vmatprep.mubr.bf16.mxu0 %v1657_v6 }
  0x39   :  { %639 = vmatprep.mubr.bf16.mxu1 %v1659_v9 }
  0x3a   :  { %1799 = vmatpush3.bf16.msra.mxu0 %v286_v10 }
  0x3b   :  { %1833 = vmatpush3.bf16.msra.mxu1 %v302_v15  ;;  %1800 = vmatprep.subr.bf16.mxu0 %v293_v16 }
  0x3c   :  { %1834 = vmatprep.subr.bf16.mxu1 %v309_v19 }
  0x3d   :  { %14 = vsyncpa [#allocation3], 0  ;;  %v284_v28 = vpack.c.bf16 %v189_v21, %v188_v20  ;;  %v300_v29 = vpack.c.bf16 %v221_v27, %v220_v26  ;;  %v110_v30 = vld [vmem:[%s3087_s3 + $0x50] sm:$0xff]  ;;  %v111_v32 = vld [vmem:[%s3087_s3 + $0x58] sm:$0xff]  ;;  %v1656_v34 = vcombine.low %v2458_v55, %v2463_v56  ;;  %v1658_v35 = vcombine.low %v2473_v60, %v2478_v61 }
  0x3e   :  { %1801 = vmatpush3.bf16.msra.mxu0 %v285_v22  ;;  %v114_v31 = vld [vmem:[%s3087_s3 + $0x70] sm:$0xff]  ;;  %v115_v33 = vld [vmem:[%s3087_s3 + $0x78] sm:$0xff]  ;;  %v1934_v48 = vld [vmem:[%s3091_s7 + $0x4] ss:$8 sps:$4 sm:$0xff]   ;;  %v1987_v50 = vmov 0   ;;  %vm715_vm0 = vcmask 130048  }
  0x3f   :  { %1835 = vmatpush3.bf16.msra.mxu1 %v301_v23  ;;  %1802 = vmatprep.subr.bf16.mxu0 %v292_v24  ;;  %v1665_v36 = vcombine.high %v110_v30, %v114_v31  ;;  %v1667_v37 = vcombine.high %v111_v32, %v115_v33  ;;  %v118_v38 = vld [vmem:[%s3087_s3 + $0x90] sm:$0xff]  ;;  %v119_v40 = vld [vmem:[%s3087_s3 + $0x98] sm:$0xff]  ;;  %v1664_v42 = vcombine.low %v110_v30, %v114_v31  ;;  %v1932_v49 = vld [vmem:[%s3091_s7] ss:$8 sps:$4 sm:$0xff]   ;;  %vm1334_vm1 = vcmask 523264  }
  0x40   :  { %1836 = vmatprep.subr.bf16.mxu1 %v308_v25  ;;  %v122_v39 = vld [vmem:[%s3087_s3 + $0xb0] sm:$0xff]  ;;  %v123_v41 = vld [vmem:[%s3087_s3 + $0xb8] sm:$0xff]  ;;  %v1666_v43 = vcombine.low %v111_v32, %v115_v33  ;;  %1930 = vset.pattern.permute.xlu0 %v1987_v50  ;;  %s1988_s3 = smov 112  }
  0x41   :  { %v1673_v44 = vcombine.high %v118_v38, %v122_v39  ;;  %v1675_v45 = vcombine.high %v119_v40, %v123_v41  ;;  %v1672_v46 = vcombine.low %v118_v38, %v122_v39  ;;  %v1674_v47 = vcombine.low %v119_v40, %v123_v41  ;;  %1931 = vset.pattern.permute.xlu1 %v1987_v50  ;;  %v1007_v51 = vld [vmem:[%s3085_s1 + $0xf0] sm:$0xff]  ;;  %v1008_v52 = vld [vmem:[%s3085_s1 + $0xf8] sm:$0xff] }
  0x42   :  { %1803 = vmatpush3.bf16.msra.mxu0 %v284_v28  ;;  %v1056_v53 = vpack.c.bf16 %v1008_v52, %v1007_v51  ;;  %v1039_v54 = vld [vmem:[%s3085_s1 + $0x1f0] sm:$0xff]  ;;  %v1040_v55 = vld [vmem:[%s3085_s1 + $0x1f8] sm:$0xff] }
  0x43   :  { %1837 = vmatpush3.bf16.msra.mxu1 %v300_v29  ;;  %739 = vmatprep.subr.bf16.mxu0 %v1934_v48  ;;  %v1072_v56 = vpack.c.bf16 %v1040_v55, %v1039_v54  ;;  %v991_v41 = vld [vmem:[%s3085_s1 + $0x70] sm:$0xff] }
  0x44   :  { %892 = vmatprep.subr.bf16.mxu1 %v1934_v48 }
  0x45   :  { %583 = vmatmul.mubr.bf16.vlgmr.msra.gmra.mxu0 %v1656_v34 }
  0x46   :  { %640 = vmatmul.mubr.bf16.vlgmr.msra.gmra.mxu1 %v1658_v35  ;;  %590 = vmatprep.mubr.bf16.mxu0 %v1665_v36 }
  0x47   :  { %647 = vmatprep.mubr.bf16.mxu1 %v1667_v37  ;;  %740 = vmatpush1.bf16.msra.mxu0 %v1932_v49 }
  0x48   :  { %893 = vmatpush1.bf16.msra.mxu1 %v1932_v49  ;;  %1856 = vmatprep.subr.bf16.mxu0 %v1056_v53 }
  0x49   :  { %1890 = vmatprep.subr.bf16.mxu1 %v1072_v56 }
  0x4d   :  { %591 = vmatmul.mubr.bf16.gmra.mxu0 %v1664_v42  ;;  %v992_v42 = vld [vmem:[%s3085_s1 + $0x78] sm:$0xff] }
  0x4e   :  { %648 = vmatmul.mubr.bf16.gmra.mxu1 %v1666_v43  ;;  %598 = vmatprep.mubr.bf16.mxu0 %v1673_v44  ;;  %v1048_v54 = vpack.c.bf16 %v992_v42, %v991_v41 }
  0x4f   :  { %655 = vmatprep.mubr.bf16.mxu1 %v1675_v45 }
  0x55   :  { %599 = vmatmul.mubr.bf16.gmra.mxu0 %v1672_v46  ;;  %v1005_v46 = vld [vmem:[%s3085_s1 + $0xe0] sm:$0xff] }
  0x56   :  { %656 = vmatmul.mubr.bf16.gmra.mxu1 %v1674_v47  ;;  %757 = vmatprep.mubr.bf16.mxu0 %v1987_v50  ;;  %v1006_v47 = vld [vmem:[%s3085_s1 + $0xe8] sm:$0xff] }
  0x57   :  { %910 = vmatprep.mubr.bf16.mxu1 %v1987_v50 }
  0xe5   :  { %v1736_v57 = vpop.f32.mrf.mxu0 }
  0xe6   :  { %v1770_v58 = vpop.f32.mrf.mxu1 }
  0xe7   :  { %v1737_v59 = vpop.f32.mrf.mxu0 }
  0xe8   :  { %v1771_v60 = vpop.f32.mrf.mxu1  ;;  %v1738_v18 = vadd.f32 %v1737_v59, %v1736_v57  ;;  %v989_v59 = vld [vmem:[%s3085_s1 + $0x60] sm:$0xff] }
  0xe9   :  { %v1739_v61 = vpop.f32.mrf.mxu0  ;;  %v1772_v19 = vadd.f32 %v1771_v60, %v1770_v58  ;;  %v1055_v58 = vpack.c.bf16 %v1006_v47, %v1005_v46  ;;  %v990_v60 = vld [vmem:[%s3085_s1 + $0x68] sm:$0xff]  ;;  %v997_v46 = vld [vmem:[%s3085_s1 + $0xa0] sm:$0xff] }
  0xea   :  { %v1773_v62 = vpop.f32.mrf.mxu1  ;;  %v998_v47 = vld [vmem:[%s3085_s1 + $0xa8] sm:$0xff] }
  0xeb   :  { %v1740_v63 = vpop.f32.mrf.mxu0  ;;  %v528_v27 = vadd.f32 %v1772_v19, %v1738_v18 }
  0xec   :  { %v1774_v0 = vpop.f32.mrf.mxu1  ;;  %v1741_v22 = vadd.f32 %v1740_v63, %v1739_v61  ;;  %v1003_v63 = vld [vmem:[%s3085_s1 + $0xd0] sm:$0xff] }
  0xed   :  { %v1742_v1 = vpop.f32.mrf.mxu0  ;;  %v1775_v23 = vadd.f32 %v1774_v0, %v1773_v62  ;;  %v1004_v0 = vld [vmem:[%s3085_s1 + $0xd8] sm:$0xff] }
  0xee   :  { %v1776_v2 = vpop.f32.mrf.mxu1 }
  0xef   :  { %v1743_v3 = vpop.f32.mrf.mxu0  ;;  %v531_v30 = vadd.f32 %v1775_v23, %v1741_v22  ;;  %v988_v22 = vld [vmem:[%s3085_s1 + $0x58] sm:$0xff] }
  0xf0   :  { %v1777_v4 = vpop.f32.mrf.mxu1  ;;  %v1744_v34 = vadd.f32 %v1743_v3, %v1742_v1 }
  0xf1   :  { %v1745_v5 = vpop.f32.mrf.mxu0  ;;  %v1778_v36 = vadd.f32 %v1777_v4, %v1776_v2 }
  0xf2   :  { %v1779_v6 = vpop.f32.mrf.mxu1 }
  0xf3   :  { %v1746_v7 = vpop.f32.mrf.mxu0  ;;  %v536_v55 = vadd.f32 %v1778_v36, %v1744_v34  ;;  %v999_v34 = vld [vmem:[%s3085_s1 + $0xb0] sm:$0xff] }
  0xf4   :  { %v1780_v8 = vpop.f32.mrf.mxu1  ;;  %v1747_v43 = vadd.f32 %v1746_v7, %v1745_v5  ;;  %v1047_v7 = vpack.c.bf16 %v990_v60, %v989_v59 }
  0xf5   :  { %v2585_v9 = vpop.f32.mrf.mxu0  ;;  %v1781_v44 = vadd.f32 %v1780_v8, %v1779_v6 }
  0xf6   :  { %v2587_v10 = vpop.f32.mrf.mxu1 }
  0xf7   :  { %v2589_v11 = vpop.f32.mrf.mxu0  ;;  %v539_v61 = vadd.f32 %v1781_v44, %v1747_v43  ;;  %v983_v44 = vld [vmem:[%s3085_s1 + $0x30] sm:$0xff] }
  0xf8   :  { %v2591_v12 = vpop.f32.mrf.mxu1  ;;  %v1750_v8 = vadd.f32 %v2589_v11, %v2585_v9 }
  0xf9   :  { %v2593_v13 = vpop.f32.mrf.mxu0 }
  0xfa   :  { %v2595_v14 = vpop.f32.mrf.mxu1 }
  0xfb   :  { %v2597_v15 = vpop.f32.mrf.mxu0 }
  0xfc   :  { %v2599_v16 = vpop.f32.mrf.mxu1  ;;  %v1753_v23 = vadd.f32 %v2597_v15, %v2593_v13 }
  0xfd   :  { %v1787_v9 = vadd.f32 %v2599_v16, %v2595_v14  ;;  %v985_v16 = vld [vmem:[%s3085_s1 + $0x40] sm:$0xff] }
 0x105   :  { %v1804_v17 = vpop.f32.mrf.mxu0 }
 0x106   :  { %v1838_v20 = vpop.f32.mrf.mxu1 }
 0x107   :  { %v1805_v21 = vpop.f32.mrf.mxu0 }
 0x108   :  { %v1806_v24 = vadd.f32 %v1805_v21, %v1804_v17  ;;  %v1839_v25 = vpop.f32.mrf.mxu1  ;;  %v1784_v17 = vadd.f32 %v2591_v12, %v2587_v10  ;;  %v987_v21 = vld [vmem:[%s3085_s1 + $0x50] sm:$0xff]  ;;  %v1001_v10 = vld [vmem:[%s3085_s1 + $0xc0] sm:$0xff]  ;;  %v1002_v12 = vld [vmem:[%s3085_s1 + $0xc8] sm:$0xff] }
 0x109   :  { %v1807_v26 = vpop.f32.mrf.mxu0  ;;  %v1840_v37 = vadd.f32 %v1839_v25, %v1838_v20  ;;  %v1054_v20 = vpack.c.bf16 %v1004_v0, %v1003_v63  ;;  %v1053_v14 = vpack.c.bf16 %v1002_v12, %v1001_v10  ;;  %v993_v63 = vld [vmem:[%s3085_s1 + $0x80] sm:$0xff]  ;;  %v994_v0 = vld [vmem:[%s3085_s1 + $0x88] sm:$0xff] }
 0x10a   :  { %v1841_v28 = vpop.f32.mrf.mxu1  ;;  %v585_v31 = vadd.f32 %v1806_v24, %v528_v27  ;;  %v544_v13 = vadd.f32 %v1784_v17, %v1750_v8  ;;  %v1943_v8 = vld [vmem:[%s3088_s4 + $0x20] ss:$16 sps:$4 sm:$0xff]   ;;  %v1947_v17 = vld [vmem:[%s3088_s4 + $0x44] ss:$16 sps:$4 sm:$0xff]   ;;  %v1022_v10 = vld [vmem:[%s3085_s1 + $0x168] sm:$0xff] }
 0x10b   :  { %v1808_v29 = vpop.f32.mrf.mxu0 }
 0x10c   :  { %v1809_v32 = vadd.f32 %v1808_v29, %v1807_v26  ;;  %v1842_v33 = vpop.f32.mrf.mxu1  ;;  %v642_v48 = vadd.f32 %v1840_v37, %v585_v31  ;;  %v1046_v29 = vpack.c.bf16 %v988_v22, %v987_v21  ;;  %v986_v31 = vld [vmem:[%s3085_s1 + $0x48] sm:$0xff]  ;;  %v1037_v21 = vld [vmem:[%s3085_s1 + $0x1e0] sm:$0xff] }
 0x10d   :  { %v1810_v35 = vpop.f32.mrf.mxu0  ;;  %v1843_v39 = vadd.f32 %v1842_v33, %v1841_v28  ;;  %v1045_v41 = vpack.c.bf16 %v986_v31, %v985_v16  ;;  %v1038_v22 = vld [vmem:[%s3085_s1 + $0x1e8] sm:$0xff]  ;;  %v1017_v16 = vld [vmem:[%s3085_s1 + $0x140] sm:$0xff] }
 0x10e   :  { %v588_v38 = vadd.f32 %v1809_v32, %v531_v30  ;;  %v1844_v40 = vpop.f32.mrf.mxu1  ;;  %v547_v32 = vadd.f32 %v1787_v9, %v1753_v23  ;;  %v1071_v9 = vpack.c.bf16 %v1038_v22, %v1037_v21  ;;  %v1018_v31 = vld [vmem:[%s3085_s1 + $0x148] sm:$0xff] }
 0x10f   :  { %v1811_v45 = vpop.f32.mrf.mxu0 }
 0x110   :  { %v645_v49 = vadd.f32 %v1843_v39, %v588_v38  ;;  %v1812_v51 = vadd.f32 %v1811_v45, %v1810_v35  ;;  %v1845_v52 = vpop.f32.mrf.mxu1  ;;  %v1000_v35 = vld [vmem:[%s3085_s1 + $0xb8] sm:$0xff] }
 0x111   :  { %v1813_v53 = vpop.f32.mrf.mxu0  ;;  %v1846_v2 = vadd.f32 %v1845_v52, %v1844_v40  ;;  %v1052_v43 = vpack.c.bf16 %v1000_v35, %v999_v34  ;;  %v984_v45 = vld [vmem:[%s3085_s1 + $0x38] sm:$0xff]  ;;  %v1937_v52 = vld [vmem:[%s3088_s4 + $0x4] ss:$16 sps:$4 sm:$0xff]   ;;  %v1061_v35 = vpack.c.bf16 %v1018_v31, %v1017_v16 }
 0x112   :  { %v1847_v56 = vpop.f32.mrf.mxu1  ;;  %v664_v57 = vpack.c.bf16 %v645_v49, %v642_v48  ;;  %v593_v1 = vadd.f32 %v1812_v51, %v536_v55  ;;  %v1044_v51 = vpack.c.bf16 %v984_v45, %v983_v44  ;;  %v981_v55 = vld [vmem:[%s3085_s1 + $0x20] sm:$0xff]  ;;  %v1032_v34 = vld [vmem:[%s3085_s1 + $0x1b8] sm:$0xff]  ;;  %v1014_v45 = vld [vmem:[%s3085_s1 + $0x128] sm:$0xff] }
 0x113   :  { %v1814_v62 = vpop.f32.mrf.mxu0  ;;  %v1013_v44 = vld [vmem:[%s3085_s1 + $0x120] sm:$0xff] }
 0x114   :  { %v1815_v3 = vadd.f32 %v1814_v62, %v1813_v53  ;;  %853 = vrot.lane.b32.xlu0 %v664_v57, %s1988_s3  ;;  %1678 = vmatmul.mubr.msk.bf16.vlgmr.msra.gmra.mxu0 %vm715_vm0, %v664_v57  ;;  %v1848_v4 = vpop.f32.mrf.mxu1  ;;  %v650_v24 = vadd.f32 %v1846_v2, %v593_v1  ;;  %v995_v57 = vld [vmem:[%s3085_s1 + $0x90] sm:$0xff]  ;;  %v980_v62 = vld [vmem:[%s3085_s1 + $0x18] sm:$0xff]  ;;  %v1049_v2 = vpack.c.bf16 %v994_v0, %v993_v63 }
 0x115   :  { %v1816_v5 = vpop.f32.mrf.mxu0  ;;  %v1849_v6 = vadd.f32 %v1848_v4, %v1847_v56  ;;  %767 = vmatprep.mubr.bf16.mxu0 %v1987_v50  ;;  %1857 = vmatpush3.bf16.msra.mxu0 %v1048_v54  ;;  %v1051_v54 = vpack.c.bf16 %v998_v47, %v997_v46  ;;  %v982_v56 = vld [vmem:[%s3085_s1 + $0x28] sm:$0xff]  ;;  %v1027_v47 = vld [vmem:[%s3085_s1 + $0x190] sm:$0xff] }
 0x116   :  { %v596_v18 = vadd.f32 %v1815_v3, %v539_v61  ;;  %v1850_v19 = vpop.f32.mrf.mxu1  ;;  %1858 = vmatprep.subr.bf16.mxu0 %v1055_v58  ;;  %v996_v58 = vld [vmem:[%s3085_s1 + $0x98] sm:$0xff]  ;;  %v1043_v59 = vpack.c.bf16 %v982_v56, %v981_v55  ;;  %v979_v61 = vld [vmem:[%s3085_s1 + $0x10] sm:$0xff]  ;;  %v977_v3 = vld [vmem:[%s3085_s1] sm:$0xff] }
 0x117   :  { %v1817_v11 = vpop.f32.mrf.mxu0  ;;  %v1050_v60 = vpack.c.bf16 %v996_v58, %v995_v57  ;;  %v1042_v1 = vpack.c.bf16 %v980_v62, %v979_v61  ;;  %v978_v4 = vld [vmem:[%s3085_s1 + $0x8] sm:$0xff]  ;;  %v1009_v58 = vld [vmem:[%s3085_s1 + $0x100] sm:$0xff] }
 0x118   :  { %v653_v25 = vadd.f32 %v1849_v6, %v596_v18  ;;  %v1818_v26 = vadd.f32 %v1817_v11, %v1816_v5  ;;  %v1851_v27 = vpop.f32.mrf.mxu1  ;;  %v1041_v5 = vpack.c.bf16 %v978_v4, %v977_v3  ;;  %v1935_v6 = vld [vmem:[%s3088_s4] ss:$16 sps:$4 sm:$0xff]   ;;  %v1026_v55 = vld [vmem:[%s3085_s1 + $0x188] sm:$0xff]  ;;  %v1955_v3 = vld [vmem:[%s3092_s8 + $0x34] ss:$8 sps:$4 sm:$0xff]  }
 0x119   :  { %v1819_v28 = vpop.f32.mrf.mxu0  ;;  %1859 = vmatpush3.bf16.msra.mxu0 %v1047_v7  ;;  %v1852_v37 = vadd.f32 %v1851_v27, %v1850_v19  ;;  %v1941_v7 = vld [vmem:[%s3088_s4 + $0x24] ss:$16 sps:$4 sm:$0xff]   ;;  %v1949_v18 = vld [vmem:[%s3088_s4 + $0x40] ss:$16 sps:$4 sm:$0xff]   ;;  %v1938_v61 = vld [vmem:[%s3088_s4 + $0x8] ss:$16 sps:$4 sm:$0xff]  }
 0x11a   :  { %v1853_v15 = vpop.f32.mrf.mxu1  ;;  %v665_v30 = vpack.c.bf16 %v653_v25, %v650_v24  ;;  %1860 = vmatprep.subr.bf16.mxu0 %v1054_v20  ;;  %v601_v36 = vadd.f32 %v1818_v26, %v544_v13  ;;  %v1023_v19 = vld [vmem:[%s3085_s1 + $0x170] sm:$0xff]  ;;  %v1024_v20 = vld [vmem:[%s3085_s1 + $0x178] sm:$0xff]  ;;  %v1021_v11 = vld [vmem:[%s3085_s1 + $0x160] sm:$0xff] }
 0x11b   :  { %v1820_v33 = vpop.f32.mrf.mxu0  ;;  %v1064_v23 = vpack.c.bf16 %v1024_v20, %v1023_v19  ;;  %v1035_v24 = vld [vmem:[%s3085_s1 + $0x1d0] sm:$0xff]  ;;  %v1036_v25 = vld [vmem:[%s3085_s1 + $0x1d8] sm:$0xff]  ;;  %v1063_v26 = vpack.c.bf16 %v1022_v10, %v1021_v11  ;;  %v1033_v13 = vld [vmem:[%s3085_s1 + $0x1c0] sm:$0xff] }
 0x11c   :  { %v1821_v38 = vadd.f32 %v1820_v33, %v1819_v28  ;;  %855 = vrot.lane.b32.xlu0 %v665_v30, %s1988_s3  ;;  %1679 = vmatmul.mubr.msk.bf16.gmra.mxu0 %vm715_vm0, %v665_v30  ;;  %v1854_v39 = vpop.f32.mrf.mxu1  ;;  %v658_v48 = vadd.f32 %v1852_v37, %v601_v36  ;;  %v1070_v27 = vpack.c.bf16 %v1036_v25, %v1035_v24  ;;  %v1019_v28 = vld [vmem:[%s3085_s1 + $0x150] sm:$0xff]  ;;  %v1944_v62 = vld [vmem:[%s3088_s4 + $0x2c] ss:$16 sps:$4 sm:$0xff]   ;;  %v1946_v63 = vld [vmem:[%s3088_s4 + $0x28] ss:$16 sps:$4 sm:$0xff]  }
 0x11d   :  { %v1855_v40 = vadd.f32 %v1854_v39, %v1853_v15  ;;  %777 = vmatprep.mubr.bf16.mxu0 %v1987_v50  ;;  %1861 = vmatpush3.bf16.msra.mxu0 %v1046_v29  ;;  %v1020_v29 = vld [vmem:[%s3085_s1 + $0x158] sm:$0xff]  ;;  %v1034_v15 = vld [vmem:[%s3085_s1 + $0x1c8] sm:$0xff]  ;;  %v1031_v33 = vld [vmem:[%s3085_s1 + $0x1b0] sm:$0xff] }
 0x11e   :  { %v604_v42 = vadd.f32 %v1821_v38, %v547_v32  ;;  %1862 = vmatprep.subr.bf16.mxu0 %v1053_v14  ;;  %v1062_v30 = vpack.c.bf16 %v1020_v29, %v1019_v28  ;;  %v1069_v14 = vpack.c.bf16 %v1034_v15, %v1033_v13  ;;  %v1068_v36 = vpack.c.bf16 %v1032_v34, %v1031_v33  ;;  %v1015_v37 = vld [vmem:[%s3085_s1 + $0x130] sm:$0xff]  ;;  %v1016_v38 = vld [vmem:[%s3085_s1 + $0x138] sm:$0xff]  ;;  %v1029_v39 = vld [vmem:[%s3085_s1 + $0x1a0] sm:$0xff] }
 0x11f   :  { %v1950_v0 = vld [vmem:[%s3088_s4 + $0x4c] ss:$16 sps:$4 sm:$0xff]  }
 0x120   :  { %v661_v49 = vadd.f32 %v1855_v40, %v604_v42  ;;  %v1030_v40 = vld [vmem:[%s3085_s1 + $0x1a8] sm:$0xff] }
 0x121   :  { %1863 = vmatpush3.bf16.msra.mxu0 %v1045_v41  ;;  %v1060_v41 = vpack.c.bf16 %v1016_v38, %v1015_v37  ;;  %v1940_v42 = vld [vmem:[%s3088_s4 + $0xc] ss:$16 sps:$4 sm:$0xff]  }
 0x122   :  { %v666_v53 = vpack.c.bf16 %v661_v49, %v658_v48  ;;  %1864 = vmatprep.subr.bf16.mxu0 %v1052_v43  ;;  %v1067_v43 = vpack.c.bf16 %v1030_v40, %v1029_v39  ;;  %v1028_v48 = vld [vmem:[%s3085_s1 + $0x198] sm:$0xff]  ;;  %v1059_v49 = vpack.c.bf16 %v1014_v45, %v1013_v44  ;;  %v1958_v4 = vld [vmem:[%s3092_s8 + $0x24] ss:$8 sps:$4 sm:$0xff]  }
 0x124   :  { %857 = vrot.lane.b32.xlu1 %v666_v53, %s1988_s3  ;;  %1680 = vmatmul.mubr.msk.bf16.gmra.mxu0 %vm715_vm0, %v666_v53  ;;  %v1012_v53 = vld [vmem:[%s3085_s1 + $0x118] sm:$0xff] }
 0x125   :  { %1865 = vmatpush3.bf16.msra.mxu0 %v1044_v51  ;;  %1165 = vmatprep.mubr.bf16.mxu0 %v1937_v52  ;;  %v1066_v51 = vpack.c.bf16 %v1028_v48, %v1027_v47  ;;  %v1011_v52 = vld [vmem:[%s3085_s1 + $0x110] sm:$0xff] }
 0x126   :  { %1866 = vmatprep.subr.bf16.mxu0 %v1051_v54  ;;  %v1025_v54 = vld [vmem:[%s3085_s1 + $0x180] sm:$0xff]  ;;  %v1058_v56 = vpack.c.bf16 %v1012_v53, %v1011_v52 }
 0x127   :  { %v1065_v57 = vpack.c.bf16 %v1026_v55, %v1025_v54 }
 0x129   :  { %1867 = vmatpush3.bf16.msra.mxu0 %v1043_v59  ;;  %v1010_v59 = vld [vmem:[%s3085_s1 + $0x108] sm:$0xff] }
 0x12a   :  { %1868 = vmatprep.subr.bf16.mxu0 %v1050_v60  ;;  %v1057_v60 = vpack.c.bf16 %v1010_v59, %v1009_v58 }
 0x12d   :  { %1869 = vmatpush3.bf16.msra.mxu0 %v1042_v1  ;;  %v1952_v1 = vld [vmem:[%s3088_s4 + $0x48] ss:$16 sps:$4 sm:$0xff]  }
 0x12e   :  { %1870 = vmatprep.subr.bf16.mxu0 %v1049_v2  ;;  %v1953_v2 = vld [vmem:[%s3092_s8 + $0x30] ss:$8 sps:$4 sm:$0xff]  }
 0x131   :  { %1871 = vmatpush3.bf16.msra.mxu0 %v1041_v5  ;;  %v1956_v5 = vld [vmem:[%s3092_s8 + $0x20] ss:$8 sps:$4 sm:$0xff]  }
 0x132   :  { %1352 = vmatprep.subr.bf16.mxu0 %v1955_v3 }
 0x134   :  { %1166 = vmatmul.mubr.bf16.vlgmr.msra.gmra.mxu0 %v1935_v6  ;;  %v1961_v6 = vld [vmem:[%s3092_s8 + $0x14] ss:$8 sps:$4 sm:$0xff]  }
 0x135   :  { %1173 = vmatprep.mubr.bf16.mxu0 %v1941_v7  ;;  %1353 = vmatpush1.bf16.msra.mxu0 %v1953_v2  ;;  %v1959_v7 = vld [vmem:[%s3092_s8 + $0x10] ss:$8 sps:$4 sm:$0xff]  }
 0x136   :  { %1354 = vmatprep.subr.bf16.mxu0 %v1958_v4 }
 0x139   :  { %1355 = vmatpush1.bf16.msra.mxu0 %v1956_v5 }
 0x13a   :  { %1356 = vmatprep.subr.bf16.mxu0 %v1961_v6 }
 0x13c   :  { %1174 = vmatmul.mubr.bf16.gmra.mxu0 %v1943_v8  ;;  %v1964_v8 = vld [vmem:[%s3092_s8 + $0x4] ss:$8 sps:$4 sm:$0xff]  }
 0x13d   :  { %1181 = vmatprep.mubr.bf16.mxu0 %v1947_v17  ;;  %1357 = vmatpush1.bf16.msra.mxu0 %v1959_v7  ;;  %v1962_v17 = vld [vmem:[%s3092_s8] ss:$8 sps:$4 sm:$0xff]   ;;  %s1989_s8 = smov 64  }
 0x13e   :  { %1358 = vmatprep.subr.bf16.mxu0 %v1964_v8 }
 0x141   :  { %1359 = vmatpush1.bf16.msra.mxu0 %v1962_v17 }
 0x144   :  { %1182 = vmatmul.mubr.bf16.gmra.mxu0 %v1949_v18 }
 0x145   :  { %1376 = vmatprep.mubr.bf16.mxu0 %v1987_v50 }
 0x186   :  { %v854_v12 = vpop.permute.xlu0 %853 }
 0x187   :  { %1683 = vmatmul.mubr.msk.bf16.vlgmr.msra.gmra.mxu1 %vm715_vm0, %v854_v12 }
 0x188   :  { %1891 = vmatpush3.bf16.msra.mxu1 %v1064_v23  ;;  %920 = vmatprep.mubr.bf16.mxu1 %v1987_v50 }
 0x189   :  { %1892 = vmatprep.subr.bf16.mxu1 %v1071_v9 }
 0x18c   :  { %1893 = vmatpush3.bf16.msra.mxu1 %v1063_v26 }
 0x18d   :  { %1894 = vmatprep.subr.bf16.mxu1 %v1070_v27 }
 0x18e   :  { %v856_v32 = vpop.permute.xlu0 %855 }
 0x18f   :  { %1684 = vmatmul.mubr.msk.bf16.gmra.mxu1 %vm715_vm0, %v856_v32 }
 0x190   :  { %1895 = vmatpush3.bf16.msra.mxu1 %v1062_v30  ;;  %930 = vmatprep.mubr.bf16.mxu1 %v1987_v50 }
 0x191   :  { %1896 = vmatprep.subr.bf16.mxu1 %v1069_v14 }
 0x194   :  { %1897 = vmatpush3.bf16.msra.mxu1 %v1061_v35 }
 0x195   :  { %1898 = vmatprep.subr.bf16.mxu1 %v1068_v36 }
 0x196   :  { %v858_v46 = vpop.permute.xlu1 %857 }
 0x197   :  { %1685 = vmatmul.mubr.msk.bf16.gmra.mxu1 %vm715_vm0, %v858_v46 }
 0x198   :  { %1899 = vmatpush3.bf16.msra.mxu1 %v1060_v41  ;;  %1222 = vmatprep.mubr.bf16.mxu1 %v1940_v42 }
 0x199   :  { %1900 = vmatprep.subr.bf16.mxu1 %v1067_v43 }
 0x19c   :  { %1901 = vmatpush3.bf16.msra.mxu1 %v1059_v49 }
 0x19d   :  { %1902 = vmatprep.subr.bf16.mxu1 %v1066_v51 }
 0x1a0   :  { %1903 = vmatpush3.bf16.msra.mxu1 %v1058_v56 }
 0x1a1   :  { %1904 = vmatprep.subr.bf16.mxu1 %v1065_v57 }
 0x1a4   :  { %1905 = vmatpush3.bf16.msra.mxu1 %v1057_v60 }
 0x1a5   :  { %1541 = vmatprep.subr.bf16.mxu1 %v1955_v3 }
 0x1a7   :  { %1223 = vmatmul.mubr.bf16.vlgmr.msra.gmra.mxu1 %v1938_v61 }
 0x1a8   :  { %1230 = vmatprep.mubr.bf16.mxu1 %v1944_v62  ;;  %1542 = vmatpush1.bf16.msra.mxu1 %v1953_v2 }
 0x1a9   :  { %1543 = vmatprep.subr.bf16.mxu1 %v1958_v4 }
 0x1ac   :  { %1544 = vmatpush1.bf16.msra.mxu1 %v1956_v5 }
 0x1ad   :  { %1545 = vmatprep.subr.bf16.mxu1 %v1961_v6 }
 0x1af   :  { %1231 = vmatmul.mubr.bf16.gmra.mxu1 %v1946_v63 }
 0x1b0   :  { %1238 = vmatprep.mubr.bf16.mxu1 %v1950_v0  ;;  %1546 = vmatpush1.bf16.msra.mxu1 %v1959_v7 }
 0x1b1   :  { %1547 = vmatprep.subr.bf16.mxu1 %v1964_v8 }
 0x1b4   :  { %1548 = vmatpush1.bf16.msra.mxu1 %v1962_v17 }
 0x1b7   :  { %1239 = vmatmul.mubr.bf16.gmra.mxu1 %v1952_v1 }
 0x1b8   :  { %1565 = vmatprep.mubr.bf16.mxu1 %v1987_v50 }
 0x1d4   :  { %v2864_v18 = vpop.f32.mrf.mxu0 }
 0x1d6   :  { %v2866_v19 = vpop.f32.mrf.mxu0 }
 0x1d8   :  { %v2868_v20 = vpop.f32.mrf.mxu0 }
 0x1da   :  { %v2870_v21 = vpop.f32.mrf.mxu0 }
 0x1dc   :  { %v2872_v22 = vpop.f32.mrf.mxu0 }
 0x1de   :  { %v2874_v23 = vpop.f32.mrf.mxu0 }
 0x1e0   :  { %v2876_v9 = vpop.f32.mrf.mxu0 }
 0x1e2   :  { %v2878_v11 = vpop.f32.mrf.mxu0 }
 0x1e4   :  { %v2880_v10 = vpop.f32.mrf.mxu0 }
 0x1e6   :  { %v2882_v12 = vpop.f32.mrf.mxu0 }
 0x1e8   :  { %v2886_v25 = vpop.f32.mrf.mxu0 }
 0x1ea   :  { %v2892_v28 = vpop.f32.mrf.mxu0 }
 0x1f4   :  { %v1872_v15 = vpop.f32.mrf.mxu0 }
 0x1f6   :  { %v1873_v16 = vpop.f32.mrf.mxu0 }
 0x1f7   :  { %v1874_v47 = vadd.f32 %v1873_v16, %v1872_v15  ;;  %v669_v15 = vld [vmem:[%s3089_s5] sm:$0xff] }
 0x1f8   :  { %v1875_v32 = vpop.f32.mrf.mxu0 }
 0x1fa   :  { %v1876_v34 = vpop.f32.mrf.mxu0 }
 0x1fb   :  { %v1877_v48 = vadd.f32 %v1876_v34, %v1875_v32 }
 0x1fc   :  { %v1878_v36 = vpop.f32.mrf.mxu0 }
 0x1fe   :  { %v1879_v38 = vpop.f32.mrf.mxu0 }
 0x1ff   :  { %v1880_v61 = vadd.f32 %v1879_v38, %v1878_v36 }
 0x200   :  { %v1881_v41 = vpop.f32.mrf.mxu0 }
 0x202   :  { %v1882_v44 = vpop.f32.mrf.mxu0 }
 0x203   :  { %v1883_v62 = vadd.f32 %v1882_v44, %v1881_v41  ;;  %v671_v44 = vld [vmem:[%s3089_s5 + $0x10] sm:$0xff] }
 0x204   :  { %v1884_v52 = vpop.f32.mrf.mxu0 }
 0x206   :  { %v1885_v57 = vpop.f32.mrf.mxu0 }
 0x207   :  { %v1886_v16 = vadd.f32 %v1885_v57, %v1884_v52  ;;  %v1262_v52 = vld [vmem:[%s3090_s6 + $0x20] sm:$0xff] }
 0x208   :  { %v1887_v0 = vpop.f32.mrf.mxu0 }
 0x20a   :  { %v1888_v6 = vpop.f32.mrf.mxu0 }
 0x20b   :  { %v1889_v32 = vadd.f32 %v1888_v6, %v1887_v0 }
 0x247   :  { %v2884_v24 = vpop.f32.mrf.mxu1 }
 0x249   :  { %v2888_v26 = vpop.f32.mrf.mxu1 }
 0x24b   :  { %v2890_v27 = vpop.f32.mrf.mxu1 }
 0x24d   :  { %v2894_v29 = vpop.f32.mrf.mxu1 }
 0x24f   :  { %v2896_v13 = vpop.f32.mrf.mxu1 }
 0x251   :  { %v2898_v30 = vpop.f32.mrf.mxu1 }
 0x253   :  { %v2900_v14 = vpop.f32.mrf.mxu1 }
 0x255   :  { %v2902_v31 = vpop.f32.mrf.mxu1 }
 0x257   :  { %v2904_v33 = vpop.f32.mrf.mxu1 }
 0x259   :  { %v2906_v35 = vpop.f32.mrf.mxu1 }
 0x25b   :  { %v2908_v37 = vpop.f32.mrf.mxu1 }
 0x25d   :  { %v2910_v39 = vpop.f32.mrf.mxu1 }
 0x267   :  { %v1906_v40 = vpop.f32.mrf.mxu1 }
 0x269   :  { %v1907_v42 = vpop.f32.mrf.mxu1 }
 0x26a   :  { %v1908_v45 = vadd.f32 %v1907_v42, %v1906_v40  ;;  %v672_v40 = vld [vmem:[%s3089_s5 + $0x18] sm:$0xff]  ;;  %v674_v42 = vld [vmem:[%s3089_s5 + $0x28] sm:$0xff] }
 0x26b   :  { %v1909_v43 = vpop.f32.mrf.mxu1 }
 0x26c   :  { %v1225_v53 = vadd.f32 %v1908_v45, %v1874_v47  ;;  %v673_v45 = vld [vmem:[%s3089_s5 + $0x20] sm:$0xff]  ;;  %v1261_v47 = vld [vmem:[%s3090_s6 + $0x18] sm:$0xff] }
 0x26d   :  { %v1910_v46 = vpop.f32.mrf.mxu1 }
 0x26e   :  { %v1911_v49 = vadd.f32 %v1910_v46, %v1909_v43  ;;  %v670_v43 = vld [vmem:[%s3089_s5 + $0x8] sm:$0xff] }
 0x26f   :  { %v1912_v51 = vpop.f32.mrf.mxu1  ;;  %v1259_v46 = vld [vmem:[%s3090_s6 + $0x8] sm:$0xff] }
 0x270   :  { %v1228_v54 = vadd.f32 %v1911_v49, %v1877_v48  ;;  %v1258_v48 = vld [vmem:[%s3090_s6] sm:$0xff]  ;;  %v1263_v49 = vld [vmem:[%s3090_s6 + $0x28] sm:$0xff] }
 0x271   :  { %v1913_v55 = vpop.f32.mrf.mxu1 }
 0x272   :  { %v1247_v56 = vpack.c.bf16 %v1228_v54, %v1225_v53  ;;  %v1914_v59 = vadd.f32 %v1913_v55, %v1912_v51  ;;  %v1260_v51 = vld [vmem:[%s3090_s6 + $0x10] sm:$0xff] }
 0x273   :  { %v1915_v58 = vpop.f32.mrf.mxu1 }
 0x274   :  { %1478 = vrot.lane.b32.xlu1 %v1247_v56, %s1989_s8  ;;  %1706 = vmatmul.mubr.msk.bf16.vlgmr.msra.gmra.mxu0 %vm1334_vm1, %v1247_v56  ;;  %v1233_v2 = vadd.f32 %v1914_v59, %v1880_v61 }
 0x275   :  { %v1916_v60 = vpop.f32.mrf.mxu1  ;;  %1386 = vmatprep.mubr.bf16.mxu0 %v1987_v50 }
 0x276   :  { %v1917_v63 = vadd.f32 %v1916_v60, %v1915_v58 }
 0x277   :  { %v1918_v1 = vpop.f32.mrf.mxu1 }
 0x278   :  { %v1236_v3 = vadd.f32 %v1917_v63, %v1883_v62 }
 0x279   :  { %v1919_v4 = vpop.f32.mrf.mxu1 }
 0x27a   :  { %v1248_v5 = vpack.c.bf16 %v1236_v3, %v1233_v2  ;;  %v1920_v8 = vadd.f32 %v1919_v4, %v1918_v1 }
 0x27b   :  { %v1921_v7 = vpop.f32.mrf.mxu1 }
 0x27c   :  { %1480 = vrot.lane.b32.xlu0 %v1248_v5, %s1989_s8  ;;  %1707 = vmatmul.mubr.msk.bf16.gmra.mxu0 %vm1334_vm1, %v1248_v5  ;;  %v1241_v36 = vadd.f32 %v1920_v8, %v1886_v16 }
 0x27d   :  { %v1922_v17 = vpop.f32.mrf.mxu1  ;;  %1396 = vmatprep.mubr.bf16.mxu0 %v1987_v50 }
 0x27e   :  { %v1923_v34 = vadd.f32 %v1922_v17, %v1921_v7 }
 0x280   :  { %v1244_v38 = vadd.f32 %v1923_v34, %v1889_v32  ;;  %677 = vperm.xlu0 %1930, %v669_v15  }
 0x282   :  { %v1249_v41 = vpack.c.bf16 %v1244_v38, %v1241_v36 }
 0x284   :  { %692 = vperm.xlu0 %1930, %v672_v40   ;;  %1482 = vrot.lane.b32.xlu1 %v1249_v41, %s1989_s8 }
 0x285   :  { %1708 = vmatmul.mubr.msk.bf16.gmra.mxu0 %vm1334_vm1, %v1249_v41 }
 0x288   :  { %702 = vperm.xlu0 %1930, %v674_v42   ;;  %682 = vperm.xlu1 %1931, %v670_v43  }
 0x28c   :  { %827 = vperm.xlu0 %1930, %v670_v43   ;;  %687 = vperm.xlu1 %1931, %v671_v44  }
 0x290   :  { %837 = vperm.xlu0 %1930, %v672_v40   ;;  %697 = vperm.xlu1 %1931, %v673_v45  }
 0x294   :  { %847 = vperm.xlu0 %1930, %v674_v42   ;;  %822 = vperm.xlu1 %1931, %v669_v15  }
 0x298   :  { %832 = vperm.xlu1 %1931, %v671_v44   ;;  %1271 = vperm.xlu0 %1930, %v1259_v46  }
 0x29c   :  { %842 = vperm.xlu1 %1931, %v673_v45   ;;  %1281 = vperm.xlu0 %1930, %v1261_v47  }
 0x2a0   :  { %1266 = vperm.xlu1 %1931, %v1258_v48   ;;  %1291 = vperm.xlu0 %1930, %v1263_v49  }
 0x2a4   :  { %1276 = vperm.xlu1 %1931, %v1260_v51   ;;  %1452 = vperm.xlu0 %1930, %v1259_v46  }
 0x2a8   :  { %1286 = vperm.xlu1 %1931, %v1262_v52   ;;  %1462 = vperm.xlu0 %1930, %v1261_v47  }
 0x2ac   :  { %1447 = vperm.xlu1 %1931, %v1258_v48   ;;  %1472 = vperm.xlu0 %1930, %v1263_v49  }
 0x2b0   :  { %1457 = vperm.xlu1 %1931, %v1260_v51  }
 0x2b4   :  { %1467 = vperm.xlu1 %1931, %v1262_v52  }
 0x2e6   :  { %v1479_v53 = vpop.permute.xlu1 %1478 }
 0x2e7   :  { %1717 = vmatmul.mubr.msk.bf16.vlgmr.msra.gmra.mxu1 %vm1334_vm1, %v1479_v53 }
 0x2e8   :  { %1575 = vmatprep.mubr.bf16.mxu1 %v1987_v50 }
 0x2ee   :  { %v1481_v54 = vpop.permute.xlu0 %1480 }
 0x2ef   :  { %1718 = vmatmul.mubr.msk.bf16.gmra.mxu1 %vm1334_vm1, %v1481_v54 }
 0x2f0   :  { %1585 = vmatprep.mubr.bf16.mxu1 %v1987_v50 }
 0x2f6   :  { %v1483_v55 = vpop.permute.xlu1 %1482 }
 0x2f7   :  { %1719 = vmatmul.mubr.msk.bf16.gmra.mxu1 %vm1334_vm1, %v1483_v55 }
 0x2fb   :  { %v678_v56 = vpop.permute.xlu0 %677 }
 0x2fc   :  { %v760_v57 = vadd.f32 %v2864_v18, %v678_v56  ;;  %v762_v58 = vadd.f32 %v2866_v19, %v678_v56 }
 0x2fe   :  { %v788_v59 = vmax.f32 %v760_v57, 0.0  ;;  %v789_v60 = vmax.f32 %v762_v58, 0.0 }
 0x2ff   :  { %v693_v61 = vpop.permute.xlu0 %692 }
 0x300   :  { %800 = vst [vmem:[#allocation2 + $0x80] sm:$0xff] %v788_v59  ;;  %801 = vst [vmem:[#allocation2 + $0x88] sm:$0xff] %v789_v60  ;;  %v774_v62 = vadd.f32 %v2876_v9, %v693_v61  ;;  %v776_v63 = vadd.f32 %v2878_v11, %v693_v61 }
 0x302   :  { %v794_v0 = vmax.f32 %v774_v62, 0.0  ;;  %v795_v1 = vmax.f32 %v776_v63, 0.0 }
 0x303   :  { %v703_v50 = vpop.permute.xlu0 %702  ;;  %v683_v2 = vpop.permute.xlu1 %682 }
 0x304   :  { %806 = vst [vmem:[#allocation2 + $0xb0] sm:$0xff] %v794_v0  ;;  %807 = vst [vmem:[#allocation2 + $0xb8] sm:$0xff] %v795_v1  ;;  %v784_v3 = vadd.f32 %v2886_v25, %v703_v50  ;;  %v786_v18 = vadd.f32 %v2892_v28, %v703_v50  ;;  %v764_v19 = vadd.f32 %v2868_v20, %v683_v2 }
 0x305   :  { %v766_v4 = vadd.f32 %v2870_v21, %v683_v2 }
 0x306   :  { %v798_v5 = vmax.f32 %v784_v3, 0.0  ;;  %v799_v6 = vmax.f32 %v786_v18, 0.0  ;;  %v790_v7 = vmax.f32 %v764_v19, 0.0 }
 0x307   :  { %v791_v9 = vmax.f32 %v766_v4, 0.0  ;;  %v828_v8 = vpop.permute.xlu0 %827  ;;  %v688_v11 = vpop.permute.xlu1 %687 }
 0x308   :  { %810 = vst [vmem:[#allocation2 + $0xd0] sm:$0xff] %v798_v5  ;;  %811 = vst [vmem:[#allocation2 + $0xd8] sm:$0xff] %v799_v6  ;;  %v917_v17 = vadd.f32 %v2890_v27, %v828_v8  ;;  %v919_v25 = vadd.f32 %v2894_v29, %v828_v8  ;;  %v770_v28 = vadd.f32 %v2872_v22, %v688_v11 }
 0x309   :  { %802 = vst [vmem:[#allocation2 + $0x90] sm:$0xff] %v790_v7  ;;  %803 = vst [vmem:[#allocation2 + $0x98] sm:$0xff] %v791_v9  ;;  %v772_v20 = vadd.f32 %v2874_v23, %v688_v11  ;;  %v34_v11 = vld [vmem:[%s3086_s2] sm:$0xff] }
 0x30a   :  { %v943_v15 = vmax.f32 %v917_v17, 0.0  ;;  %v944_v21 = vmax.f32 %v919_v25, 0.0  ;;  %v792_v16 = vmax.f32 %v770_v28, 0.0  ;;  %v35_v17 = vld [vmem:[%s3086_s2 + $0x8] sm:$0xff]  ;;  %v36_v25 = vld [vmem:[%s3086_s2 + $0x10] sm:$0xff]  ;;  %50 = vst [vmem:[#allocation2] sm:$0xff] %v34_v11 }
 0x30b   :  { %v793_v32 = vmax.f32 %v772_v20, 0.0  ;;  %v838_v34 = vpop.permute.xlu0 %837  ;;  %v698_v36 = vpop.permute.xlu1 %697  ;;  %51 = vst [vmem:[#allocation2 + $0x8] sm:$0xff] %v35_v17  ;;  %52 = vst [vmem:[#allocation2 + $0x10] sm:$0xff] %v36_v25 }
 0x30c   :  { %955 = vst [vmem:[#allocation2 + $0x1d0] sm:$0xff] %v943_v15  ;;  %956 = vst [vmem:[#allocation2 + $0x1d8] sm:$0xff] %v944_v21  ;;  %v927_v38 = vadd.f32 %v2900_v14, %v838_v34  ;;  %v929_v27 = vadd.f32 %v2902_v31, %v838_v34  ;;  %v780_v29 = vadd.f32 %v2880_v10, %v698_v36  ;;  %v37_v21 = vld [vmem:[%s3086_s2 + $0x18] sm:$0xff]  ;;  %v40_v34 = vld [vmem:[%s3086_s2 + $0x30] sm:$0xff] }
 0x30d   :  { %804 = vst [vmem:[#allocation2 + $0xa0] sm:$0xff] %v792_v16  ;;  %805 = vst [vmem:[#allocation2 + $0xa8] sm:$0xff] %v793_v32  ;;  %v782_v22 = vadd.f32 %v2882_v12, %v698_v36  ;;  %v38_v16 = vld [vmem:[%s3086_s2 + $0x20] sm:$0xff]  ;;  %v39_v32 = vld [vmem:[%s3086_s2 + $0x28] sm:$0xff] }
 0x30e   :  { %v947_v40 = vmax.f32 %v927_v38, 0.0  ;;  %v948_v23 = vmax.f32 %v929_v27, 0.0  ;;  %v796_v41 = vmax.f32 %v780_v29, 0.0  ;;  %v41_v36 = vld [vmem:[%s3086_s2 + $0x38] sm:$0xff]  ;;  %v42_v38 = vld [vmem:[%s3086_s2 + $0x40] sm:$0xff]  ;;  %53 = vst [vmem:[#allocation2 + $0x18] sm:$0xff] %v37_v21 }
 0x30f   :  { %v797_v42 = vmax.f32 %v782_v22, 0.0  ;;  %v848_v43 = vpop.permute.xlu0 %847  ;;  %v823_v44 = vpop.permute.xlu1 %822  ;;  %54 = vst [vmem:[#allocation2 + $0x20] sm:$0xff] %v38_v16  ;;  %55 = vst [vmem:[#allocation2 + $0x28] sm:$0xff] %v39_v32  ;;  %v43_v22 = vld [vmem:[%s3086_s2 + $0x48] sm:$0xff] }
 0x310   :  { %959 = vst [vmem:[#allocation2 + $0x1f0] sm:$0xff] %v947_v40  ;;  %960 = vst [vmem:[#allocation2 + $0x1f8] sm:$0xff] %v948_v23  ;;  %v937_v45 = vadd.f32 %v2908_v37, %v848_v43  ;;  %v939_v14 = vadd.f32 %v2910_v39, %v848_v43  ;;  %v913_v31 = vadd.f32 %v2884_v24, %v823_v44  ;;  %v44_v40 = vld [vmem:[%s3086_s2 + $0x50] sm:$0xff]  ;;  %v45_v23 = vld [vmem:[%s3086_s2 + $0x58] sm:$0xff] }
 0x311   :  { %808 = vst [vmem:[#allocation2 + $0xc0] sm:$0xff] %v796_v41  ;;  %809 = vst [vmem:[#allocation2 + $0xc8] sm:$0xff] %v797_v42  ;;  %v915_v10 = vadd.f32 %v2888_v26, %v823_v44  ;;  %v46_v42 = vld [vmem:[%s3086_s2 + $0x60] sm:$0xff]  ;;  %v47_v43 = vld [vmem:[%s3086_s2 + $0x68] sm:$0xff] }
 0x312   :  { %v951_v46 = vmax.f32 %v937_v45, 0.0  ;;  %v952_v12 = vmax.f32 %v939_v14, 0.0  ;;  %v941_v47 = vmax.f32 %v913_v31, 0.0  ;;  %56 = vst [vmem:[#allocation2 + $0x30] sm:$0xff] %v40_v34  ;;  %57 = vst [vmem:[#allocation2 + $0x38] sm:$0xff] %v41_v36  ;;  %v48_v44 = vld [vmem:[%s3086_s2 + $0x70] sm:$0xff] }
 0x313   :  { %v942_v48 = vmax.f32 %v915_v10, 0.0  ;;  %v833_v49 = vpop.permute.xlu1 %832  ;;  %58 = vst [vmem:[#allocation2 + $0x40] sm:$0xff] %v42_v38  ;;  %59 = vst [vmem:[#allocation2 + $0x48] sm:$0xff] %v43_v22  ;;  %v49_v31 = vld [vmem:[%s3086_s2 + $0x78] sm:$0xff]  ;;  %v1636_v10 = vld [vmem:[%s3086_s2 + $0x80] sm:$0xff] }
 0x314   :  { %963 = vst [vmem:[#allocation2 + $0x210] sm:$0xff] %v951_v46  ;;  %964 = vst [vmem:[#allocation2 + $0x218] sm:$0xff] %v952_v12  ;;  %v923_v51 = vadd.f32 %v2896_v13, %v833_v49  ;;  %v925_v52 = vadd.f32 %v2898_v30, %v833_v49  ;;  %v1272_v13 = vpop.permute.xlu0 %1271  ;;  %v1637_v46 = vld [vmem:[%s3086_s2 + $0x88] sm:$0xff]  ;;  %v1639_v49 = vld [vmem:[%s3086_s2 + $0x98] sm:$0xff] }
 0x315   :  { %953 = vst [vmem:[#allocation2 + $0x1c0] sm:$0xff] %v941_v47  ;;  %954 = vst [vmem:[#allocation2 + $0x1c8] sm:$0xff] %v942_v48  ;;  %v1638_v48 = vld [vmem:[%s3086_s2 + $0x90] sm:$0xff] }
 0x316   :  { %v945_v37 = vmax.f32 %v923_v51, 0.0  ;;  %v946_v53 = vmax.f32 %v925_v52, 0.0  ;;  %60 = vst [vmem:[#allocation2 + $0x50] sm:$0xff] %v44_v40  ;;  %61 = vst [vmem:[#allocation2 + $0x58] sm:$0xff] %v45_v23  ;;  %v1640_v51 = vld [vmem:[%s3086_s2 + $0xa0] sm:$0xff] }
 0x317   :  { %v843_v39 = vpop.permute.xlu1 %842  ;;  %62 = vst [vmem:[#allocation2 + $0x60] sm:$0xff] %v46_v42  ;;  %63 = vst [vmem:[#allocation2 + $0x68] sm:$0xff] %v47_v43 }
 0x318   :  { %957 = vst [vmem:[#allocation2 + $0x1e0] sm:$0xff] %v945_v37  ;;  %958 = vst [vmem:[#allocation2 + $0x1e8] sm:$0xff] %v946_v53  ;;  %v933_v24 = vadd.f32 %v2904_v33, %v843_v39  ;;  %v935_v26 = vadd.f32 %v2906_v35, %v843_v39  ;;  %v1282_v19 = vpop.permute.xlu0 %1281  ;;  %v1641_v37 = vld [vmem:[%s3086_s2 + $0xa8] sm:$0xff]  ;;  %v1642_v53 = vld [vmem:[%s3086_s2 + $0xb0] sm:$0xff] }
 0x319   :  { %64 = vst [vmem:[#allocation2 + $0x70] sm:$0xff] %v48_v44  ;;  %65 = vst [vmem:[#allocation2 + $0x78] sm:$0xff] %v49_v31  ;;  %v1643_v39 = vld [vmem:[%s3086_s2 + $0xb8] sm:$0xff] }
 0x31a   :  { %v949_v54 = vmax.f32 %v933_v24, 0.0  ;;  %v950_v55 = vmax.f32 %v935_v26, 0.0  ;;  %84 = vst [vmem:[#allocation2 + $0x140] sm:$0xff] %v1636_v10  ;;  %85 = vst [vmem:[#allocation2 + $0x148] sm:$0xff] %v1637_v46 }
 0x31b   :  { %v1267_v56 = vpop.permute.xlu1 %1266  ;;  %86 = vst [vmem:[#allocation2 + $0x150] sm:$0xff] %v1638_v48  ;;  %87 = vst [vmem:[#allocation2 + $0x158] sm:$0xff] %v1639_v49 }
 0x31c   :  { %961 = vst [vmem:[#allocation2 + $0x200] sm:$0xff] %v949_v54  ;;  %962 = vst [vmem:[#allocation2 + $0x208] sm:$0xff] %v950_v55  ;;  %v1292_v14 = vpop.permute.xlu0 %1291  ;;  %v1644_v54 = vld [vmem:[%s3086_s2 + $0xc0] sm:$0xff]  ;;  %v1645_v55 = vld [vmem:[%s3086_s2 + $0xc8] sm:$0xff] }
 0x31d   :  { %88 = vst [vmem:[#allocation2 + $0x160] sm:$0xff] %v1640_v51  ;;  %89 = vst [vmem:[#allocation2 + $0x168] sm:$0xff] %v1641_v37 }
 0x31e   :  { %90 = vst [vmem:[#allocation2 + $0x170] sm:$0xff] %v1642_v53  ;;  %91 = vst [vmem:[#allocation2 + $0x178] sm:$0xff] %v1643_v39 }
 0x31f   :  { %v1277_v1 = vpop.permute.xlu1 %1276  ;;  %92 = vst [vmem:[#allocation2 + $0x180] sm:$0xff] %v1644_v54  ;;  %93 = vst [vmem:[#allocation2 + $0x188] sm:$0xff] %v1645_v55 }
 0x323   :  { %v1287_v15 = vpop.permute.xlu1 %1286 }
 0x334   :  { %v1378_v57 = vpop.f32.mrf.mxu0 }
 0x335   :  { %v1379_v58 = vadd.f32 %v1378_v57, %v1267_v56 }
 0x336   :  { %v1380_v59 = vpop.f32.mrf.mxu0 }
 0x337   :  { %v1407_v60 = vmax.f32 %v1379_v58, 0.0  ;;  %v1381_v30 = vadd.f32 %v1380_v59, %v1267_v56  ;;  %v1646_v56 = vld [vmem:[%s3086_s2 + $0xd0] sm:$0xff]  ;;  %v1647_v58 = vld [vmem:[%s3086_s2 + $0xd8] sm:$0xff]  ;;  %v1648_v59 = vld [vmem:[%s3086_s2 + $0xe0] sm:$0xff] }
 0x338   :  { %v1382_v61 = vpop.f32.mrf.mxu0  ;;  %94 = vst [vmem:[#allocation2 + $0x190] sm:$0xff] %v1646_v56  ;;  %95 = vst [vmem:[#allocation2 + $0x198] sm:$0xff] %v1647_v58 }
 0x339   :  { %1419 = vst [vmem:[#allocation2 + $0xe0] sm:$0xff] %v1407_v60  ;;  %v1408_v62 = vmax.f32 %v1381_v30, 0.0  ;;  %v1383_v63 = vadd.f32 %v1382_v61, %v1272_v13  ;;  %v1650_v61 = vld [vmem:[%s3086_s2 + $0xf0] sm:$0xff]  ;;  %96 = vst [vmem:[#allocation2 + $0x1a0] sm:$0xff] %v1648_v59 }
 0x33a   :  { %v1384_v0 = vpop.f32.mrf.mxu0  ;;  %98 = vst [vmem:[#allocation2 + $0x1b0] sm:$0xff] %v1650_v61 }
 0x33b   :  { %1420 = vst [vmem:[#allocation2 + $0xe8] sm:$0xff] %v1408_v62  ;;  %v1409_v33 = vmax.f32 %v1383_v63, 0.0  ;;  %v1385_v35 = vadd.f32 %v1384_v0, %v1272_v13  ;;  %v1649_v13 = vld [vmem:[%s3086_s2 + $0xe8] sm:$0xff]  ;;  %v1651_v62 = vld [vmem:[%s3086_s2 + $0xf8] sm:$0xff]  ;;  %v1448_v0 = vpop.permute.xlu1 %1447  ;;  %s1990_s2 = smov [#allocation2]  }
 0x33c   :  { %v1388_v50 = vpop.f32.mrf.mxu0  ;;  %97 = vst [vmem:[#allocation2 + $0x1a8] sm:$0xff] %v1649_v13  ;;  %99 = vst [vmem:[#allocation2 + $0x1b8] sm:$0xff] %v1651_v62  ;;  %s1625_s22 = sshll.u32 %s1990_s2, 4  ;;  %s1626_s22 = int_to_ptr.vmem [resolvable:$true] %s1625_s22 }
 0x33d   :  { %1421 = vst [vmem:[#allocation2 + $0xf0] sm:$0xff] %v1409_v33  ;;  %v1410_v2 = vmax.f32 %v1385_v35, 0.0  ;;  %v1389_v3 = vadd.f32 %v1388_v50, %v1277_v1  ;;  %s1965_s23 = scalar_lea.vmem %s1626_s22, 10240  ;;  %p1970_p1 = scmp.lt.s32.totalorder %s1626_s22, %s1626_s22 }
 0x33e   :  { %v1390_v18 = vpop.f32.mrf.mxu0  ;;  %p1966_p0 = scmp.ne.s32.totalorder %s1626_s22, %s1965_s23  ;;  %p1971_p2 = scmp.lt.s32.totalorder %s1965_s23, %s1965_s23 }
 0x33f   :  { %1422 = vst [vmem:[#allocation2 + $0xf8] sm:$0xff] %v1410_v2  ;;  %v1411_v4 = vmax.f32 %v1389_v3, 0.0  ;;  %v1391_v5 = vadd.f32 %v1390_v18, %v1277_v1  ;;  %v1453_v3 = vpop.permute.xlu0 %1452 }
 0x340   :  { %v1392_v6 = vpop.f32.mrf.mxu0  ;;  %p1972_p3 = por %p1971_p2, %p1970_p1 }
 0x341   :  { %1423 = vst [vmem:[#allocation2 + $0x100] sm:$0xff] %v1411_v4  ;;  %v1412_v7 = vmax.f32 %v1391_v5, 0.0  ;;  %v1393_v9 = vadd.f32 %v1392_v6, %v1282_v19 }
 0x342   :  { %v1394_v8 = vpop.f32.mrf.mxu0  ;;  %p1973_p4 = pnand %p1972_p3, %p1966_p0 }
 0x343   :  { %1424 = vst [vmem:[#allocation2 + $0x108] sm:$0xff] %v1412_v7  ;;  %v1413_v28 = vmax.f32 %v1393_v9, 0.0  ;;  %v1395_v20 = vadd.f32 %v1394_v8, %v1282_v19  ;;  %v1458_v9 = vpop.permute.xlu1 %1457 }
 0x345   :  { %1425 = vst [vmem:[#allocation2 + $0x110] sm:$0xff] %v1413_v28  ;;  %v1414_v27 = vmax.f32 %v1395_v20, 0.0  ;;  %v1398_v29 = vpop.f32.mrf.mxu0 }
 0x346   :  { %v1399_v41 = vadd.f32 %v1398_v29, %v1287_v15 }
 0x347   :  { %1426 = vst [vmem:[#allocation2 + $0x118] sm:$0xff] %v1414_v27  ;;  %v1400_v45 = vpop.f32.mrf.mxu0  ;;  %v1468_v27 = vpop.permute.xlu1 %1467 }
 0x348   :  { %v1415_v12 = vmax.f32 %v1399_v41, 0.0  ;;  %v1401_v47 = vadd.f32 %v1400_v45, %v1287_v15  ;;  %v1463_v15 = vpop.permute.xlu0 %1462 }
 0x349   :  { %v1402_v52 = vpop.f32.mrf.mxu0 }
 0x34a   :  { %1427 = vst [vmem:[#allocation2 + $0x120] sm:$0xff] %v1415_v12  ;;  %v1416_v24 = vmax.f32 %v1401_v47, 0.0  ;;  %v1403_v26 = vadd.f32 %v1402_v52, %v1292_v14 }
 0x34b   :  { %v1404_v57 = vpop.f32.mrf.mxu0 }
 0x34c   :  { %1428 = vst [vmem:[#allocation2 + $0x128] sm:$0xff] %v1416_v24  ;;  %v1417_v60 = vmax.f32 %v1403_v26, 0.0  ;;  %v1405_v30 = vadd.f32 %v1404_v57, %v1292_v14  ;;  %v1473_v43 = vpop.permute.xlu0 %1472 }
 0x34e   :  { %1429 = vst [vmem:[#allocation2 + $0x130] sm:$0xff] %v1417_v60  ;;  %v1418_v63 = vmax.f32 %v1405_v30, 0.0 }
 0x350   :  { %1430 = vst [vmem:[#allocation2 + $0x138] sm:$0xff] %v1418_v63 }
 0x3a7   :  { %v1567_v1 = vpop.f32.mrf.mxu1 }
 0x3a8   :  { %v1568_v33 = vadd.f32 %v1567_v1, %v1448_v0 }
 0x3a9   :  { %v1569_v35 = vpop.f32.mrf.mxu1 }
 0x3aa   :  { %v1596_v50 = vmax.f32 %v1568_v33, 0.0  ;;  %v1570_v2 = vadd.f32 %v1569_v35, %v1448_v0 }
 0x3ab   :  { %v1571_v18 = vpop.f32.mrf.mxu1 }
 0x3ac   :  { %1608 = vst [vmem:[#allocation2 + $0x220] sm:$0xff] %v1596_v50  ;;  %v1597_v19 = vmax.f32 %v1570_v2, 0.0  ;;  %v1572_v4 = vadd.f32 %v1571_v18, %v1453_v3 }
 0x3ad   :  { %v1573_v5 = vpop.f32.mrf.mxu1 }
 0x3ae   :  { %1609 = vst [vmem:[#allocation2 + $0x228] sm:$0xff] %v1597_v19  ;;  %v1598_v6 = vmax.f32 %v1572_v4, 0.0  ;;  %v1574_v7 = vadd.f32 %v1573_v5, %v1453_v3 }
 0x3af   :  { %v1577_v8 = vpop.f32.mrf.mxu1 }
 0x3b0   :  { %1610 = vst [vmem:[#allocation2 + $0x230] sm:$0xff] %v1598_v6  ;;  %v1599_v11 = vmax.f32 %v1574_v7, 0.0  ;;  %v1578_v17 = vadd.f32 %v1577_v8, %v1458_v9 }
 0x3b1   :  { %v1579_v25 = vpop.f32.mrf.mxu1 }
 0x3b2   :  { %1611 = vst [vmem:[#allocation2 + $0x238] sm:$0xff] %v1599_v11  ;;  %v1600_v28 = vmax.f32 %v1578_v17, 0.0  ;;  %v1580_v20 = vadd.f32 %v1579_v25, %v1458_v9 }
 0x3b3   :  { %v1581_v21 = vpop.f32.mrf.mxu1 }
 0x3b4   :  { %1612 = vst [vmem:[#allocation2 + $0x240] sm:$0xff] %v1600_v28  ;;  %v1601_v16 = vmax.f32 %v1580_v20, 0.0  ;;  %v1582_v32 = vadd.f32 %v1581_v21, %v1463_v15 }
 0x3b5   :  { %v1583_v34 = vpop.f32.mrf.mxu1 }
 0x3b6   :  { %1613 = vst [vmem:[#allocation2 + $0x248] sm:$0xff] %v1601_v16  ;;  %v1602_v36 = vmax.f32 %v1582_v32, 0.0  ;;  %v1584_v38 = vadd.f32 %v1583_v34, %v1463_v15 }
 0x3b7   :  { %v1587_v29 = vpop.f32.mrf.mxu1 }
 0x3b8   :  { %1614 = vst [vmem:[#allocation2 + $0x250] sm:$0xff] %v1602_v36  ;;  %v1603_v22 = vmax.f32 %v1584_v38, 0.0  ;;  %v1588_v40 = vadd.f32 %v1587_v29, %v1468_v27 }
 0x3b9   :  { %v1589_v23 = vpop.f32.mrf.mxu1 }
 0x3ba   :  { %1615 = vst [vmem:[#allocation2 + $0x258] sm:$0xff] %v1603_v22  ;;  %v1604_v41 = vmax.f32 %v1588_v40, 0.0  ;;  %v1590_v42 = vadd.f32 %v1589_v23, %v1468_v27 }
 0x3bb   :  { %v1591_v44 = vpop.f32.mrf.mxu1 }
 0x3bc   :  { %1616 = vst [vmem:[#allocation2 + $0x260] sm:$0xff] %v1604_v41  ;;  %v1605_v45 = vmax.f32 %v1590_v42, 0.0  ;;  %v1592_v14 = vadd.f32 %v1591_v44, %v1473_v43 }
 0x3bd   :  { %v1593_v31 = vpop.f32.mrf.mxu1 }
 0x3be   :  { %1617 = vst [vmem:[#allocation2 + $0x268] sm:$0xff] %v1605_v45  ;;  %v1606_v10 = vmax.f32 %v1592_v14, 0.0  ;;  %v1594_v46 = vadd.f32 %v1593_v31, %v1473_v43 }
 0x3c0   :  { %1618 = vst [vmem:[#allocation2 + $0x270] sm:$0xff] %v1606_v10  ;;  %v1607_v12 = vmax.f32 %v1594_v46, 0.0 }
 0x3c2   :  { %1619 = vst [vmem:[#allocation2 + $0x278] sm:$0xff] %v1607_v12 }
 0x3c3   :  { %1976 = shalt.err (!%p1973_p4)
}
 0x3c4   :  { %s1991_s24 = smov 256   ;;  %s1992_s7 = smov 16  }
 0x3c5   :  { %1631 = dma.vmem_to_hbm [thread:$0]  %s1626_s22, 10240, %s3093_s9, [#allocation3], %s1991_s24, %s1991_s24, %s1992_s7  }
 0x3c6   :  { %1985 = dma.done.wait [#allocation3], 10240  }
 0x3c7   :  { %1986 = vsyncadd [#allocation3], 4294957056 }
 0x3c8   :  { %1635 = vsyncpa [#allocation3], 1 }

</bundles_post_ra>
